<compile_context>
chip_gen: v5e
topology: v5e:2x2
jax: 0.10.0
libtpu: 0.0.40
codegen_flags: <defaults>
</compile_context>

<pallas_src>
import functools
import warnings

import numpy as np

import jax
import jax.numpy as jnp
from jax import lax
from jax.experimental import pallas as pl
from jax.experimental.pallas import tpu as pltpu


def _round_up(x: int, m: int) -> int:
    return ((x + m - 1) // m) * m


# --------------------------------------------------------------------------- #
# Kernel
# --------------------------------------------------------------------------- #
def _convlstm_kernel(x_ref, h_ref, c_ref, w_ref, b_ref, coord_ref,
                     h_out_ref, c_out_ref, *, H, W, hidden_p, k):
    """One batch-block per grid step.

    x_ref     : (Cx,   N)  input activations, f32        (N = Bb * HWp lanes)
    h_ref     : (Hp,   N)  hidden state, f32  (Hp = hidden padded to mult. of 8)
    c_ref     : (Hp,   N)  cell state, f32
    w_ref     : (4*Hp, k*k*(Cx+Hp))  packed conv weight, bf16, (ky, kx, ci) cols
    b_ref     : (4*Hp, 1)  bias, f32
    coord_ref : (2,    N)  per-lane (row, col) image coordinates, int32
    h_out_ref / c_out_ref : (Hp, N)
    """
    p = k // 2

    # combined = concat([x, h]) built ONCE; every tap rolls this single buffer.
    combined = jnp.concatenate([x_ref[...], h_ref[...]], axis=0)   # (Cin_p, N) f32
    N = combined.shape[1]

    coords = coord_ref[...]
    yy = coords[0:1, :]            # (1, N) row of each lane within its image
    xx = coords[1:2, :]            # (1, N) column of each lane

    # im2col via XLU lane rolls + specialised border masks:
    #   patches[(ky*k+kx)*Cin_p + ci, b*HWp + y*W + x] = combined[ci, b, y+dy, x+dx]
    # with zeros outside the image (= the 'same' zero padding).  In-bounds taps
    # never cross an image boundary, so folding batch into lanes is leak-free.
    taps = []
    for dy in range(-p, p + 1):
        vy = None if dy == 0 else (yy >= -dy if dy < 0 else yy < H - dy)
        for dx in range(-p, p + 1):
            vx = None if dx == 0 else (xx >= -dx if dx < 0 else xx < W - dx)
            off = dy * W + dx
            t = combined if off == 0 else pltpu.roll(combined, (-off) % N, axis=1)
            if vy is not None and vx is not None:
                t = jnp.where(vy & vx, t, 0.0)
            elif vy is not None:
                t = jnp.where(vy, t, 0.0)
            elif vx is not None:
                t = jnp.where(vx, t, 0.0)
            # centre tap (dy == dx == 0): no mask, no roll.
            taps.append(t.astype(jnp.bfloat16))          # bf16 BEFORE the concat
    patches = jnp.concatenate(taps, axis=0)              # (k*k*Cin_p, N) bf16 only

    # Single fused MXU matmul, f32 accumulation, then bias.
    acc = jnp.dot(w_ref[...], patches, preferred_element_type=jnp.float32)
    acc = acc + b_ref[...]                               # (4*Hp, N) f32

    hp = hidden_p            # gate order matches torch.split: i, f, o, g
    i_g = jax.nn.sigmoid(acc[0 * hp:1 * hp])             # 8-aligned row slices
    f_g = jax.nn.sigmoid(acc[1 * hp:2 * hp])
    o_g = jax.nn.sigmoid(acc[2 * hp:3 * hp])
    g_g = jnp.tanh(acc[3 * hp:4 * hp])

    c_next = f_g * c_ref[...] + i_g * g_g
    h_out_ref[...] = o_g * jnp.tanh(c_next)
    c_out_ref[...] = c_next


# --------------------------------------------------------------------------- #
# Packing helpers (channel-major, batch folded into lanes)
# --------------------------------------------------------------------------- #
def pack_conv_lstm_params(weight, bias, *, input_dim, hidden_dim, kernel_size):
    """OIHW Conv2d params -> ((4*Hp, k*k*(Cx+Hp)) bf16, (4*Hp, 1) f32).

    Call ONCE per model (outside any recurrent time loop)."""
    k, Cx, hd = kernel_size, input_dim, hidden_dim
    Hp = _round_up(hd, 8)
    w = jnp.asarray(weight, jnp.float32).reshape(4, hd, Cx + hd, k, k)
    b = jnp.asarray(bias, jnp.float32).reshape(4, hd)
    if Hp != hd:
        w = jnp.pad(w, ((0, 0), (0, Hp - hd), (0, 0), (0, 0), (0, 0)))  # gate rows
        w = jnp.pad(w, ((0, 0), (0, 0), (0, Hp - hd), (0, 0), (0, 0)))  # h in-chans
        b = jnp.pad(b, ((0, 0), (0, Hp - hd)))
    Co_p, Cin_p = 4 * Hp, Cx + Hp
    w2 = jnp.transpose(w.reshape(Co_p, Cin_p, k, k), (0, 2, 3, 1))
    w2 = w2.reshape(Co_p, k * k * Cin_p).astype(jnp.bfloat16)
    return w2, b.reshape(Co_p, 1)


def pack_activations(a_nchw, channels_padded, lanes_per_image):
    """(B, C, H, W) f32 -> (channels_padded, B * lanes_per_image) f32."""
    B, C, H, W = a_nchw.shape
    a = jnp.asarray(a_nchw, jnp.float32).reshape(B, C, H * W).transpose(1, 0, 2)
    pc, ps = channels_padded - C, lanes_per_image - H * W
    if pc or ps:
        a = jnp.pad(a, ((0, pc), (0, 0), (0, ps)))
    return a.reshape(channels_padded, B * lanes_per_image)


def unpack_activations(a_packed, batch, channels, H, W):
    """Inverse of pack_activations (drops channel / lane padding)."""
    lanes = a_packed.shape[1] // batch
    a = a_packed.reshape(-1, batch, lanes)[:channels, :, :H * W]
    return a.transpose(1, 0, 2).reshape(batch, channels, H, W)


# --------------------------------------------------------------------------- #
# VMEM accounting
# --------------------------------------------------------------------------- #
def _vmem_cap_bytes():
    """Per-generation scoped-VMEM cap: ~40 MiB on v7x (64 MiB physical),
    ~96 MiB on v5e / v6e (128 MiB physical)."""
    try:
        phys = int(pltpu.get_tpu_info().vmem_capacity_bytes)
    except Exception:
        phys = 64 << 20
    return max(min((phys * 3) // 4, phys - (24 << 20)), 24 << 20)


def _step_vmem_bytes(Bb, HWp, Cx, Hp, K_p):
    """Per-grid-step footprint; blocks counted double-buffered exactly once."""
    N, Cin_p, Co_p = Bb * HWp, Cx + Hp, 4 * Hp
    blocks = 2 * 4 * N * (Cx + 2 * Hp)                       # x/h/c input blocks
    blocks += 2 * 4 * N * (2 * Hp)                           # h/c output blocks
    blocks += 2 * (2 * Co_p * K_p + 4 * Co_p + 4 * 2 * N)    # weight/bias/coords
    tmp = 4 * Cin_p * N                                      # combined (f32)
    tmp += 2 * K_p * N                                       # bf16 patch matrix
    tmp += 4 * Co_p * N                                      # f32 matmul acc
    tmp += 4 * 6 * Hp * N                                    # gates + c/h temps
    tmp += 16 * N                                            # coords / masks
    return blocks + tmp


# --------------------------------------------------------------------------- #
# Step on packed state (use this inside a recurrent driver)
# --------------------------------------------------------------------------- #
def conv_lstm_cell_step(x_p, h_p, c_p, w_packed, b_packed, *, input_dim,
                        hidden_dim, H, W, kernel_size, batch,
                        batch_block=None, donate_state=False):
    """One ConvLSTMCell step on packed (channel-major, lane-folded) state.

    Returns (h_next_packed, c_next_packed).  Set donate_state=True inside a
    recurrent scan so h/c are updated in place via input_output_aliases."""
    Cx, hd, k, B = input_dim, hidden_dim, kernel_size, batch
    Hp = _round_up(hd, 8)
    HWp = _round_up(H * W, 128)
    Cin_p, Co_p = Cx + Hp, 4 * Hp
    K_p = k * k * Cin_p

    cap = _vmem_cap_bytes()
    if batch_block is None:
        batch_block = 1
        for bb in range(B, 0, -1):
            if B % bb == 0 and _step_vmem_bytes(bb, HWp, Cx, Hp, K_p) * 3 // 2 <= cap:
                batch_block = bb
                break
    Bb = batch_block
    assert B % Bb == 0, "batch_block must divide batch"
    N = Bb * HWp
    need = _step_vmem_bytes(Bb, HWp, Cx, Hp, K_p)
    vmem_limit = int(min(cap, max(need + need // 2, 16 << 20)))
    # TODO(synk): for very large H*W (single-image footprint above the cap), add
    # a second grid axis over row tiles with a (k//2)-row halo; not needed here.

    # Per-lane (row, col) coordinates inside each image span — compile-time
    # constants, so the kernel contains no integer div/mod.
    fl = np.arange(N, dtype=np.int32) % HWp
    coords = jnp.asarray(np.stack([fl // W, fl % W], axis=0))    # (2, N) int32

    kernel = functools.partial(_convlstm_kernel, H=H, W=W, hidden_p=Hp, k=k)

    call_kwargs = {}
    if donate_state:
        call_kwargs["input_output_aliases"] = {1: 0, 2: 1}       # h->h_out, c->c_out

    h_next, c_next = pl.pallas_call(
        kernel,
        out_shape=(jax.ShapeDtypeStruct((Hp, B * HWp), jnp.float32),
                   jax.ShapeDtypeStruct((Hp, B * HWp), jnp.float32)),
        grid_spec=pltpu.PrefetchScalarGridSpec(
            num_scalar_prefetch=0,
            grid=(B // Bb,),
            in_specs=[
                pl.BlockSpec((Cx, N), lambda b: (0, b)),
                pl.BlockSpec((Hp, N), lambda b: (0, b)),
                pl.BlockSpec((Hp, N), lambda b: (0, b)),
                pl.BlockSpec((Co_p, K_p), lambda b: (0, 0)),
                pl.BlockSpec((Co_p, 1), lambda b: (0, 0)),
                pl.BlockSpec((2, N), lambda b: (0, 0)),
            ],
            out_specs=[
                pl.BlockSpec((Hp, N), lambda b: (0, b)),
                pl.BlockSpec((Hp, N), lambda b: (0, b)),
            ],
        ),
        compiler_params=pltpu.CompilerParams(
            dimension_semantics=("parallel",),
            vmem_limit_bytes=vmem_limit),
        **call_kwargs,
    )(x_p, h_p, c_p, w_packed, b_packed, coords)
    return h_next, c_next


# --------------------------------------------------------------------------- #
# PyTorch-compatible single-call forward (NCHW in, NCHW out)
# --------------------------------------------------------------------------- #
def conv_lstm_cell_forward(x_nchw, h_nchw, c_nchw, weight, bias, *, kernel_size):
    """ConvLSTMCell.forward.  For a recurrent scan, pack params/state once and
    use conv_lstm_cell_step(..., donate_state=True) per time step instead."""
    B, Cx, H, W = x_nchw.shape
    hidden = h_nchw.shape[1]
    Hp = _round_up(hidden, 8)
    HWp = _round_up(H * W, 128)

    w2, b2 = pack_conv_lstm_params(weight, bias, input_dim=Cx,
                                   hidden_dim=hidden, kernel_size=kernel_size)
    x_p = pack_activations(x_nchw, Cx, HWp)
    h_p = pack_activations(h_nchw, Hp, HWp)
    c_p = pack_activations(c_nchw, Hp, HWp)

    h_np, c_np = conv_lstm_cell_step(
        x_p, h_p, c_p, w2, b2, input_dim=Cx, hidden_dim=hidden,
        H=H, W=W, kernel_size=kernel_size, batch=B)

    h_next = unpack_activations(h_np, B, hidden, H, W)
    c_next = unpack_activations(c_np, B, hidden, H, W)
    return h_next, (h_next, c_next)


# --------------------------------------------------------------------------- #
# Pure-JAX reference (mirrors the PyTorch forward) and demo
# --------------------------------------------------------------------------- #
def _reference_forward(x, h, c, weight, bias, *, kernel_size):
    p = kernel_size // 2
    combined = jnp.concatenate([x, h], axis=1)
    conv = lax.conv_general_dilated(
        combined, weight, window_strides=(1, 1), padding=[(p, p), (p, p)],
        dimension_numbers=("NCHW", "OIHW", "NCHW"))
    conv = conv + bias[None, :, None, None]
    cc_i, cc_f, cc_o, cc_g = jnp.split(conv, 4, axis=1)
    i = jax.nn.sigmoid(cc_i)
    f = jax.nn.sigmoid(cc_f)
    o = jax.nn.sigmoid(cc_o)
    g = jnp.tanh(cc_g)
    c_next = f * c + i * g
    return o * jnp.tanh(c_next), c_next


def _make_inputs(key, B, Cx, hd, H, W, k):
    kx, kh, kc, kw, kb = jax.random.split(key, 5)
    x = jax.random.normal(kx, (B, Cx, H, W), jnp.float32)
    h = jax.random.normal(kh, (B, hd, H, W), jnp.float32)
    c = jax.random.normal(kc, (B, hd, H, W), jnp.float32)
    fan_in = (Cx + hd) * k * k
    bound = 1.0 / float(fan_in) ** 0.5
    w = jax.random.uniform(kw, (4 * hd, Cx + hd, k, k), jnp.float32, -bound, bound)
    b = jax.random.uniform(kb, (4 * hd,), jnp.float32, -bound, bound)
    return x, h, c, w, b


def _check(name, got, want, tol=5e-2):
    # Tolerance is relaxed because the conv matmul uses bf16 operands with f32
    # accumulation (observed error ~1e-3); keep f32 patches if exact parity needed.
    err = float(jnp.max(jnp.abs(got - want)))
    assert jnp.allclose(got, want, atol=tol, rtol=tol), f"{name}: max|err|={err}"


if __name__ == "__main__":
    warnings.filterwarnings("ignore", message=".*donated.*")
    key = jax.random.PRNGKey(0)
    k1, k2 = jax.random.split(key)
    k = 3

    # Case 1: aligned shapes (hidden=8, 16x16 -> H*W=256).
    B, Cx, hd, H, W = 2, 4, 8, 16, 16
    x, h0, c0, w, b = _make_inputs(k1, B, Cx, hd, H, W, k)
    h1, (_, c1) = conv_lstm_cell_forward(x, h0, c0, w, b, kernel_size=k)
    jax.block_until_ready((h1, c1))
    h_ref, c_ref = _reference_forward(x, h0, c0, w, b, kernel_size=k)
    _check("case1 h", h1, h_ref)
    _check("case1 c", c1, c_ref)

    # Case 2: unaligned shapes exercising channel (6->8) and lane (144->256) padding.
    B2, Cx2, hd2, H2, W2 = 2, 3, 6, 12, 12
    x2, h02, c02, w2_, b2_ = _make_inputs(k2, B2, Cx2, hd2, H2, W2, k)
    h1b, (_, c1b) = conv_lstm_cell_forward(x2, h02, c02, w2_, b2_, kernel_size=k)
    jax.block_until_ready((h1b, c1b))
    h_ref2, c_ref2 = _reference_forward(x2, h02, c02, w2_, b2_, kernel_size=k)
    _check("case2 h", h1b, h_ref2)
    _check("case2 c", c1b, c_ref2)

    # Recurrent driver for case 1: params packed ONCE, state kept in the
    # kernel-native packed layout, h/c updated in place via input_output_aliases.
    steps = 3
    Hp, HWp = _round_up(hd, 8), _round_up(H * W, 128)
    wp, bp = pack_conv_lstm_params(w, b, input_dim=Cx, hidden_dim=hd, kernel_size=k)
    step_fn = jax.jit(
        functools.partial(conv_lstm_cell_step, input_dim=Cx, hidden_dim=hd,
                          H=H, W=W, kernel_size=k, batch=B, donate_state=True),
        donate_argnums=(1, 2))
    x_p = pack_activations(x, Cx, HWp)
    h_p = pack_activations(h0, Hp, HWp)
    c_p = pack_activations(c0, Hp, HWp)
    for _ in range(steps):
        h_p, c_p = step_fn(x_p, h_p, c_p, wp, bp)
    jax.block_until_ready((h_p, c_p))

    h_ref_t, c_ref_t = h0, c0
    for _ in range(steps):
        h_ref_t, c_ref_t = _reference_forward(x, h_ref_t, c_ref_t, w, b,
                                              kernel_size=k)
    _check("scan h", unpack_activations(h_p, B, hd, H, W), h_ref_t)
    _check("scan c", unpack_activations(c_p, B, hd, H, W), c_ref_t)

    print("KERNEL_OK")
</pallas_src>

<mosaic_0001>
module attributes {stable_mosaic.version = 11 : i64} {
  func.func @_convlstm_kernel(%arg0: i32, %arg1: memref<4x512xf32, #tpu.memory_space<vmem>>, %arg2: memref<8x512xf32, #tpu.memory_space<vmem>>, %arg3: memref<8x512xf32, #tpu.memory_space<vmem>>, %arg4: memref<32x108xbf16, #tpu.memory_space<vmem>>, %arg5: memref<32x1xf32, #tpu.memory_space<vmem>>, %arg6: memref<2x512xi32, #tpu.memory_space<vmem>>, %arg7: memref<8x512xf32, #tpu.memory_space<vmem>>, %arg8: memref<8x512xf32, #tpu.memory_space<vmem>>) attributes {dimension_semantics = [#tpu.dimension_semantics<parallel>], iteration_bounds = array<i64: 1>, scalar_prefetch = 0 : i64, scratch_operands = 0 : i64, tpu.core_type = #tpu.core_type<tc>, window_params = [{transform_indices = @transform_0, window_bounds = array<i64: 4, 512>}, {transform_indices = @transform_1, window_bounds = array<i64: 8, 512>}, {transform_indices = @transform_2, window_bounds = array<i64: 8, 512>}, {pipeline_mode = #tpu.pipeline_mode<synchronous>, transform_indices = @transform_3, window_bounds = array<i64: 32, 108>}, {pipeline_mode = #tpu.pipeline_mode<synchronous>, transform_indices = @transform_4, window_bounds = array<i64: 32, 1>}, {pipeline_mode = #tpu.pipeline_mode<synchronous>, transform_indices = @transform_5, window_bounds = array<i64: 2, 512>}, {transform_indices = @transform_6, window_bounds = array<i64: 8, 512>}, {transform_indices = @transform_7, window_bounds = array<i64: 8, 512>}]} {
    %c0 = arith.constant 0 : index
    %c0_0 = arith.constant 0 : index
    %0 = vector.load %arg1[%c0, %c0_0] : memref<4x512xf32, #tpu.memory_space<vmem>>, vector<4x512xf32>
    %c0_1 = arith.constant 0 : index
    %c0_2 = arith.constant 0 : index
    %1 = vector.load %arg2[%c0_1, %c0_2] : memref<8x512xf32, #tpu.memory_space<vmem>>, vector<8x512xf32>
    %2 = tpu.concatenate %0, %1 in 0 : vector<4x512xf32>, vector<8x512xf32> -> vector<12x512xf32>
    %c0_3 = arith.constant 0 : index
    %c0_4 = arith.constant 0 : index
    %3 = vector.load %arg6[%c0_3, %c0_4] : memref<2x512xi32, #tpu.memory_space<vmem>>, vector<2x512xi32>
    %4 = vector.extract_strided_slice %3 {offsets = [0, 0], sizes = [1, 512], strides = [1, 1]} : vector<2x512xi32> to vector<1x512xi32>
    %5 = vector.extract_strided_slice %3 {offsets = [1, 0], sizes = [1, 512], strides = [1, 1]} : vector<2x512xi32> to vector<1x512xi32>
    %c1_i32 = arith.constant 1 : i32
    %6 = vector.broadcast %c1_i32 : i32 to vector<1x512xi32>
    %7 = arith.cmpi sge, %4, %6 : vector<1x512xi32>
    %c1_i32_5 = arith.constant 1 : i32
    %8 = vector.broadcast %c1_i32_5 : i32 to vector<1x512xi32>
    %9 = arith.cmpi sge, %5, %8 : vector<1x512xi32>
    %c17_i32 = arith.constant 17 : i32
    %10 = tpu.dynamic_rotate %2 by %c17_i32 dim 1 : vector<12x512xf32>, i32 -> vector<12x512xf32>
    %11 = arith.andi %7, %9 : vector<1x512xi1>
    %cst = arith.constant 0.000000e+00 : f32
    %12 = vector.shape_cast %11 : vector<1x512xi1> to vector<1x512xi1>
    %13 = vector.broadcast %12 : vector<1x512xi1> to vector<12x512xi1>
    %14 = vector.broadcast %cst : f32 to vector<12x512xf32>
    %15 = arith.select %13, %10, %14 : vector<12x512xi1>, vector<12x512xf32>
    %16 = arith.truncf %15 : vector<12x512xf32> to vector<12x512xbf16>
    %c16_i32 = arith.constant 16 : i32
    %17 = tpu.dynamic_rotate %2 by %c16_i32 dim 1 : vector<12x512xf32>, i32 -> vector<12x512xf32>
    %cst_6 = arith.constant 0.000000e+00 : f32
    %18 = vector.shape_cast %7 : vector<1x512xi1> to vector<1x512xi1>
    %19 = vector.broadcast %18 : vector<1x512xi1> to vector<12x512xi1>
    %20 = vector.broadcast %cst_6 : f32 to vector<12x512xf32>
    %21 = arith.select %19, %17, %20 : vector<12x512xi1>, vector<12x512xf32>
    %22 = arith.truncf %21 : vector<12x512xf32> to vector<12x512xbf16>
    %c15_i32 = arith.constant 15 : i32
    %23 = vector.broadcast %c15_i32 : i32 to vector<1x512xi32>
    %24 = arith.cmpi slt, %5, %23 : vector<1x512xi32>
    %c15_i32_7 = arith.constant 15 : i32
    %25 = tpu.dynamic_rotate %2 by %c15_i32_7 dim 1 : vector<12x512xf32>, i32 -> vector<12x512xf32>
    %26 = arith.andi %7, %24 : vector<1x512xi1>
    %cst_8 = arith.constant 0.000000e+00 : f32
    %27 = vector.shape_cast %26 : vector<1x512xi1> to vector<1x512xi1>
    %28 = vector.broadcast %27 : vector<1x512xi1> to vector<12x512xi1>
    %29 = vector.broadcast %cst_8 : f32 to vector<12x512xf32>
    %30 = arith.select %28, %25, %29 : vector<12x512xi1>, vector<12x512xf32>
    %31 = arith.truncf %30 : vector<12x512xf32> to vector<12x512xbf16>
    %c1_i32_9 = arith.constant 1 : i32
    %32 = vector.broadcast %c1_i32_9 : i32 to vector<1x512xi32>
    %33 = arith.cmpi sge, %5, %32 : vector<1x512xi32>
    %c1_i32_10 = arith.constant 1 : i32
    %34 = tpu.dynamic_rotate %2 by %c1_i32_10 dim 1 : vector<12x512xf32>, i32 -> vector<12x512xf32>
    %cst_11 = arith.constant 0.000000e+00 : f32
    %35 = vector.shape_cast %33 : vector<1x512xi1> to vector<1x512xi1>
    %36 = vector.broadcast %35 : vector<1x512xi1> to vector<12x512xi1>
    %37 = vector.broadcast %cst_11 : f32 to vector<12x512xf32>
    %38 = arith.select %36, %34, %37 : vector<12x512xi1>, vector<12x512xf32>
    %39 = arith.truncf %38 : vector<12x512xf32> to vector<12x512xbf16>
    %40 = arith.truncf %2 : vector<12x512xf32> to vector<12x512xbf16>
    %c15_i32_12 = arith.constant 15 : i32
    %41 = vector.broadcast %c15_i32_12 : i32 to vector<1x512xi32>
    %42 = arith.cmpi slt, %5, %41 : vector<1x512xi32>
    %c511_i32 = arith.constant 511 : i32
    %43 = tpu.dynamic_rotate %2 by %c511_i32 dim 1 : vector<12x512xf32>, i32 -> vector<12x512xf32>
    %cst_13 = arith.constant 0.000000e+00 : f32
    %44 = vector.shape_cast %42 : vector<1x512xi1> to vector<1x512xi1>
    %45 = vector.broadcast %44 : vector<1x512xi1> to vector<12x512xi1>
    %46 = vector.broadcast %cst_13 : f32 to vector<12x512xf32>
    %47 = arith.select %45, %43, %46 : vector<12x512xi1>, vector<12x512xf32>
    %48 = arith.truncf %47 : vector<12x512xf32> to vector<12x512xbf16>
    %c15_i32_14 = arith.constant 15 : i32
    %49 = vector.broadcast %c15_i32_14 : i32 to vector<1x512xi32>
    %50 = arith.cmpi slt, %4, %49 : vector<1x512xi32>
    %c1_i32_15 = arith.constant 1 : i32
    %51 = vector.broadcast %c1_i32_15 : i32 to vector<1x512xi32>
    %52 = arith.cmpi sge, %5, %51 : vector<1x512xi32>
    %c497_i32 = arith.constant 497 : i32
    %53 = tpu.dynamic_rotate %2 by %c497_i32 dim 1 : vector<12x512xf32>, i32 -> vector<12x512xf32>
    %54 = arith.andi %50, %52 : vector<1x512xi1>
    %cst_16 = arith.constant 0.000000e+00 : f32
    %55 = vector.shape_cast %54 : vector<1x512xi1> to vector<1x512xi1>
    %56 = vector.broadcast %55 : vector<1x512xi1> to vector<12x512xi1>
    %57 = vector.broadcast %cst_16 : f32 to vector<12x512xf32>
    %58 = arith.select %56, %53, %57 : vector<12x512xi1>, vector<12x512xf32>
    %59 = arith.truncf %58 : vector<12x512xf32> to vector<12x512xbf16>
    %c496_i32 = arith.constant 496 : i32
    %60 = tpu.dynamic_rotate %2 by %c496_i32 dim 1 : vector<12x512xf32>, i32 -> vector<12x512xf32>
    %cst_17 = arith.constant 0.000000e+00 : f32
    %61 = vector.shape_cast %50 : vector<1x512xi1> to vector<1x512xi1>
    %62 = vector.broadcast %61 : vector<1x512xi1> to vector<12x512xi1>
    %63 = vector.broadcast %cst_17 : f32 to vector<12x512xf32>
    %64 = arith.select %62, %60, %63 : vector<12x512xi1>, vector<12x512xf32>
    %65 = arith.truncf %64 : vector<12x512xf32> to vector<12x512xbf16>
    %c15_i32_18 = arith.constant 15 : i32
    %66 = vector.broadcast %c15_i32_18 : i32 to vector<1x512xi32>
    %67 = arith.cmpi slt, %5, %66 : vector<1x512xi32>
    %c495_i32 = arith.constant 495 : i32
    %68 = tpu.dynamic_rotate %2 by %c495_i32 dim 1 : vector<12x512xf32>, i32 -> vector<12x512xf32>
    %69 = arith.andi %50, %67 : vector<1x512xi1>
    %cst_19 = arith.constant 0.000000e+00 : f32
    %70 = vector.shape_cast %69 : vector<1x512xi1> to vector<1x512xi1>
    %71 = vector.broadcast %70 : vector<1x512xi1> to vector<12x512xi1>
    %72 = vector.broadcast %cst_19 : f32 to vector<12x512xf32>
    %73 = arith.select %71, %68, %72 : vector<12x512xi1>, vector<12x512xf32>
    %74 = arith.truncf %73 : vector<12x512xf32> to vector<12x512xbf16>
    %75 = tpu.concatenate %16, %22, %31, %39, %40, %48, %59, %65, %74 in 0 : vector<12x512xbf16>, vector<12x512xbf16>, vector<12x512xbf16>, vector<12x512xbf16>, vector<12x512xbf16>, vector<12x512xbf16>, vector<12x512xbf16>, vector<12x512xbf16>, vector<12x512xbf16> -> vector<108x512xbf16>
    %c0_20 = arith.constant 0 : index
    %c0_21 = arith.constant 0 : index
    %76 = vector.load %arg4[%c0_20, %c0_21] : memref<32x108xbf16, #tpu.memory_space<vmem>>, vector<32x108xbf16>
    %cst_22 = arith.constant dense<0.000000e+00> : vector<32x512xf32>
    %77 = tpu.matmul %76, %75, %cst_22 {dimension_numbers = #tpu.dot_dimension_numbers<[1], [0], [0], [1], [0, 0, 1, 1], [], []>} : vector<32x108xbf16>, vector<108x512xbf16>, vector<32x512xf32> -> vector<32x512xf32>
    %c0_23 = arith.constant 0 : index
    %c0_24 = arith.constant 0 : index
    %78 = vector.load %arg5[%c0_23, %c0_24] : memref<32x1xf32, #tpu.memory_space<vmem>>, vector<32x1xf32>
    %79 = vector.broadcast %78 : vector<32x1xf32> to vector<32x512xf32>
    %80 = arith.addf %77, %79 : vector<32x512xf32>
    %81 = vector.extract_strided_slice %80 {offsets = [0, 0], sizes = [8, 512], strides = [1, 1]} : vector<32x512xf32> to vector<8x512xf32>
    %82 = arith.negf %81 : vector<8x512xf32>
    %83 = math.exp %82 : vector<8x512xf32>
    %cst_25 = arith.constant 1.000000e+00 : f32
    %84 = vector.broadcast %cst_25 : f32 to vector<8x512xf32>
    %85 = arith.addf %84, %83 : vector<8x512xf32>
    %86 = arith.divf %84, %85 : vector<8x512xf32>
    %87 = vector.extract_strided_slice %80 {offsets = [8, 0], sizes = [8, 512], strides = [1, 1]} : vector<32x512xf32> to vector<8x512xf32>
    %88 = arith.negf %87 : vector<8x512xf32>
    %89 = math.exp %88 : vector<8x512xf32>
    %cst_26 = arith.constant 1.000000e+00 : f32
    %90 = vector.broadcast %cst_26 : f32 to vector<8x512xf32>
    %91 = arith.addf %90, %89 : vector<8x512xf32>
    %92 = arith.divf %90, %91 : vector<8x512xf32>
    %93 = vector.extract_strided_slice %80 {offsets = [16, 0], sizes = [8, 512], strides = [1, 1]} : vector<32x512xf32> to vector<8x512xf32>
    %94 = arith.negf %93 : vector<8x512xf32>
    %95 = math.exp %94 : vector<8x512xf32>
    %cst_27 = arith.constant 1.000000e+00 : f32
    %96 = vector.broadcast %cst_27 : f32 to vector<8x512xf32>
    %97 = arith.addf %96, %95 : vector<8x512xf32>
    %98 = arith.divf %96, %97 : vector<8x512xf32>
    %99 = vector.extract_strided_slice %80 {offsets = [24, 0], sizes = [8, 512], strides = [1, 1]} : vector<32x512xf32> to vector<8x512xf32>
    %100 = math.tanh %99 : vector<8x512xf32>
    %c0_28 = arith.constant 0 : index
    %c0_29 = arith.constant 0 : index
    %101 = vector.load %arg3[%c0_28, %c0_29] : memref<8x512xf32, #tpu.memory_space<vmem>>, vector<8x512xf32>
    %102 = arith.mulf %92, %101 : vector<8x512xf32>
    %103 = arith.mulf %86, %100 : vector<8x512xf32>
    %104 = arith.addf %102, %103 : vector<8x512xf32>
    %105 = math.tanh %104 : vector<8x512xf32>
    %106 = arith.mulf %98, %105 : vector<8x512xf32>
    %c0_30 = arith.constant 0 : index
    %c0_31 = arith.constant 0 : index
    %107 = vector.load %arg7[%c0_30, %c0_31] : memref<8x512xf32, #tpu.memory_space<vmem>>, vector<8x512xf32>
    tpu.vector_store %arg7[%c0_30, %c0_31], %106 {strides = array<i32>} : memref<8x512xf32, #tpu.memory_space<vmem>>, vector<8x512xf32>,
    %c0_32 = arith.constant 0 : index
    %c0_33 = arith.constant 0 : index
    %108 = vector.load %arg8[%c0_32, %c0_33] : memref<8x512xf32, #tpu.memory_space<vmem>>, vector<8x512xf32>
    tpu.vector_store %arg8[%c0_32, %c0_33], %104 {strides = array<i32>} : memref<8x512xf32, #tpu.memory_space<vmem>>, vector<8x512xf32>,
    return
  }
  func.func @transform_0(%arg0: i32) -> (i32, i32) {
    %c0_i32 = arith.constant 0 : i32
    %c0_i32_0 = arith.constant 0 : i32
    return %c0_i32, %arg0 : i32, i32
  }
  func.func @transform_1(%arg0: i32) -> (i32, i32) {
    %c0_i32 = arith.constant 0 : i32
    %c0_i32_0 = arith.constant 0 : i32
    return %c0_i32, %arg0 : i32, i32
  }
  func.func @transform_2(%arg0: i32) -> (i32, i32) {
    %c0_i32 = arith.constant 0 : i32
    %c0_i32_0 = arith.constant 0 : i32
    return %c0_i32, %arg0 : i32, i32
  }
  func.func @transform_3(%arg0: i32) -> (i32, i32) {
    %c0_i32 = arith.constant 0 : i32
    %c0_i32_0 = arith.constant 0 : i32
    %c0_i32_1 = arith.constant 0 : i32
    return %c0_i32, %c0_i32_0 : i32, i32
  }
  func.func @transform_4(%arg0: i32) -> (i32, i32) {
    %c0_i32 = arith.constant 0 : i32
    %c0_i32_0 = arith.constant 0 : i32
    %c0_i32_1 = arith.constant 0 : i32
    return %c0_i32, %c0_i32_0 : i32, i32
  }
  func.func @transform_5(%arg0: i32) -> (i32, i32) {
    %c0_i32 = arith.constant 0 : i32
    %c0_i32_0 = arith.constant 0 : i32
    %c0_i32_1 = arith.constant 0 : i32
    return %c0_i32, %c0_i32_0 : i32, i32
  }
  func.func @transform_6(%arg0: i32) -> (i32, i32) {
    %c0_i32 = arith.constant 0 : i32
    %c0_i32_0 = arith.constant 0 : i32
    return %c0_i32, %arg0 : i32, i32
  }
  func.func @transform_7(%arg0: i32) -> (i32, i32) {
    %c0_i32 = arith.constant 0 : i32
    %c0_i32_0 = arith.constant 0 : i32
    return %c0_i32, %arg0 : i32, i32
  }
}

</mosaic_0001>

<bundles_post_ra>
// kernel: tpu_custom_call.1
= control target key start
LH: loop header
LB: loop body
LE: loop exit
PB: predicated region body
PF: predicated region fallthrough
CT: control target
= control target key end

     0   :  { %13 = vsyncpa [#allocation3], 0  ;;  %s2830_s0 = inlined_call_operand.hbm [shape: f32[4,512], index: 0, kind: input, shape index: {}]   ;;  %s2831_s1 = inlined_call_operand.vmem [shape: f32[8,512], index: 1, kind: input, shape index: {}]   ;;  %s2832_s2 = inlined_call_operand.hbm [shape: f32[8,512], index: 2, kind: input, shape index: {}]   ;;  %s2833_s3 = inlined_call_operand.hbm [shape: bf16[32,108], index: 3, kind: input, shape index: {}]   ;;  %s2834_s4 = inlined_call_operand.vmem [shape: f32[32,1], index: 4, kind: input, shape index: {}]   ;;  %s2835_s5 = inlined_call_operand.hbm [shape: s32[2,512], index: 5, kind: input, shape index: {}]   ;;  %s2836_s6 = inlined_call_operand.hbm [shape: f32[8,512], index: 6, kind: output, shape index: {0}]   ;;  %s2837_s7 = inlined_call_operand.hbm [shape: f32[8,512], index: 7, kind: output, shape index: {1}]  }
   0x1   :  { %14 = vsyncpa [#allocation6], 0 }
   0x2   :  { %15 = vsyncpa [#allocation9], 0 }
   0x3   :  { %16 = vsyncpa [#allocation4], 0  ;;  %s36_s26 = sshll.u32 %s2832_s2, 4  ;;  %s37_s26 = int_to_ptr.hbm [resolvable:$true] %s36_s26 }
   0x4   :  { %17 = vsyncpa [#allocation12], 0  ;;  %s1658_s27 = smov [#allocation5]   ;;  %s23_s8 = sshll.u32 %s2830_s0, 4  ;;  %s24_s8 = int_to_ptr.hbm [resolvable:$true] %s23_s8 }
   0x5   :  { %s38_s28 = sshll.u32 %s1658_s27, 4  ;;  %s1659_s9 = smov [#allocation2]   ;;  %s39_s28 = int_to_ptr.vmem [resolvable:$true] %s38_s28 }
   0x6   :  { %41 = dma.hbm_to_vmem [thread:$0]  %s37_s26, 512, %s39_s28, [#allocation6]  }
   0x7   :  { %s25_s10 = sshll.u32 %s1659_s9, 4  ;;  %s46_s13 = sshll.u32 %s2833_s3, 4  ;;  %s26_s10 = int_to_ptr.vmem [resolvable:$true] %s25_s10  ;;  %s47_s13 = int_to_ptr.hbm [resolvable:$true] %s46_s13 }
   0x8   :  { %28 = dma.hbm_to_vmem [thread:$0]  %s24_s8, 256, %s26_s10, [#allocation3]  }
   0x9   :  { %s1660_s2 = smov [#allocation7]   ;;  %s62_s17 = sshll.u32 %s2835_s5, 4  ;;  %s63_s17 = int_to_ptr.hbm [resolvable:$true] %s62_s17 }
   0xa   :  { %s48_s14 = sshll.u32 %s1660_s2, 4  ;;  %s1661_s18 = smov 64   ;;  %s49_s14 = int_to_ptr.vmem [resolvable:$true] %s48_s14 }
   0xb   :  { %s1662_s0 = smov 4   ;;  %s1663_s19 = smov [#allocation8]  }
   0xc   :  { %54 = dma.hbm_to_vmem [thread:$0]  %s47_s13, 256, %s49_s14, [#allocation6], %s1661_s18, %s1661_s18, %s1662_s0  }
   0xd   :  { %s64_s20 = sshll.u32 %s1663_s19, 4  ;;  %s65_s20 = int_to_ptr.vmem [resolvable:$true] %s64_s20 }
   0xe   :  { %67 = dma.hbm_to_vmem [thread:$0]  %s63_s17, 128, %s65_s20, [#allocation9]  }
   0xf   :  { %1648 = dma.done.wait [#allocation3], 256  }
  0x10   :  { %1649 = vsyncadd [#allocation3], 4294967040 }
  0x11   :  { %1650 = dma.done.wait [#allocation6], 768  }
  0x12   :  { %1651 = vsyncadd [#allocation6], 4294966528 }
  0x13   :  { %1652 = dma.done.wait [#allocation9], 128  }
  0x14   :  { %1653 = vsyncadd [#allocation9], 4294967168  ;;  %v87_v0 = vld [vmem:[%s2831_s1] sm:$0xff]  ;;  %v89_v1 = vld [vmem:[%s2831_s1 + $0x10] sm:$0xff]  ;;  %s1664_s25 = smov 113   ;;  %vm116_vm0 = vcmask 1043456   ;;  %v139_v40 = vlaneseq }
  0x15   :  { %v86_v2 = vld [vmem:[#allocation2 + $0x8] sm:$0xff]  ;;  %v1733_v3 = vrot.slane %v87_v0, 4  ;;  %v1735_v4 = vrot.slane %v89_v1, 4  ;;  %v85_v5 = vld [vmem:[#allocation2] sm:$0xff]  ;;  %v90_v6 = vld [vmem:[%s2831_s1 + $0x18] sm:$0xff]  ;;  %s1665_s26 = smov 111  }
  0x16   :  { %95 = vst [vmem:[#allocation1 + $0x10] ss:$2 sm:$0xff] %v86_v2  ;;  %v1743_v8 = vrot.slane %v90_v6, 4  ;;  %s1666_s27 = smov 112   ;;  %v88_v18 = vld [vmem:[%s2831_s1 + $0x8] sm:$0xff]  ;;  %s1667_s30 = smov 127  }
  0x17   :  { %93 = vst [vmem:[#allocation1] ss:$2 sm:$0xff] %v85_v5  ;;  %v1277_v7 = vpack.i.bf16 %v1735_v4, %v1733_v3  ;;  %v1768_v20 = vrot.slane %v88_v18, 4  ;;  %s1668_s1 = smov 1   ;;  %s1669_s8 = smov 15   ;;  %v2838_v29 = vmov 0  }
  0x18   :  { %s1670_s9 = smov 16   ;;  %1438 = vset.pattern.permute.xlu0 %v2838_v29  ;;  %1439 = vset.pattern.permute.xlu1 %v2838_v29  ;;  %s1672_s10 = smov 17   ;;  %v1792_v30 = vld [vmem:[#allocation8] sm:$0xff]  ;;  %v1827_v46 = vand.u32 127, %v139_v40 }
  0x19   :  { %1278 = vrot.lane.b32.xlu0 %v1277_v7, %s1664_s25  ;;  %v1372_v26 = vpack.i.bf16 %v1735_v4, %v1768_v20  ;;  %1437 = vset.pattern.permute.xlu2 %v2838_v29  ;;  %vm229_vm1 = vcmp.lt.s32.totalorder %v1792_v30, 15  ;;  %vm122_vm2 = vcmp.ge.s32.totalorder %v1792_v30, 1  ;;  %s1211_s20 = sshll.u32 %s2837_s7, 4  ;;  %s1674_s7 = smov [#allocation10]   ;;  %s1212_s20 = int_to_ptr.hbm [resolvable:$true] %s1211_s20 }
  0x1a   :  { %v1797_v31 = vsel %vm229_vm1, 1, %v2838_v29  ;;  %v1804_v33 = vsel %vm122_vm2, 1, %v2838_v29  ;;  %vm454_vm7 = vcmp.lt.s32.totalorder %v1827_v46, 112  ;;  %vm503_vm9 = vcmp.lt.s32.totalorder %v1827_v46, 111  ;;  %s1198_s3 = sshll.u32 %s1674_s7, 4  ;;  %s1200_s5 = sshll.u32 %s2836_s6, 4  ;;  %s1199_s3 = int_to_ptr.vmem [resolvable:$true] %s1198_s3  ;;  %s1201_s5 = int_to_ptr.hbm [resolvable:$true] %s1200_s5 }
  0x1b   :  { %v1229_v34 = vrot.slane %v1797_v31, 9  ;;  %v1228_v35 = vrot.slane %v1804_v33, 9  ;;  %v465_v41 = vperm.slane %v1797_v31, 4  ;;  %v466_v50 = vperm.slane %v1797_v31, 6 }
  0x1c   :  { %vm403_vm10 = vcmp.lt.s32.totalorder %v1827_v46, 113 }
  0x1d   :  { %v99_v9 = vld.sshfl [vmem:[#allocation1 + $0x18] sm:$0xff pattern:$0x75316420]  ;;  %v98_v10 = vld.sshfl [vmem:[#allocation1 + $0x10] sm:$0xff pattern:$0x75316420] }
  0x1e   :  { %v1747_v11 = vsel %vm116_vm0, %v99_v9, %v1743_v8  ;;  %v1751_v12 = vsel %vm116_vm0, %v98_v10, %v1735_v4  ;;  %v96_v13 = vld.sshfl [vmem:[#allocation1] sm:$0xff pattern:$0x75316420]  ;;  %v97_v21 = vld.sshfl [vmem:[#allocation1 + $0x8] sm:$0xff pattern:$0x75316420] }
  0x1f   :  { %v1292_v14 = vpack.i.bf16 %v1743_v8, %v1747_v11  ;;  %v1302_v15 = vpack.i.bf16 %v1735_v4, %v1751_v12  ;;  %v1759_v16 = vsel %vm116_vm0, %v96_v13, %v1733_v3  ;;  %v1773_v22 = vsel %vm116_vm0, %v97_v21, %v1768_v20 }
  0x20   :  { %v1282_v17 = vpack.i.bf16 %v1733_v3, %v1759_v16  ;;  %v1312_v19 = vpack.i.bf16 %v1759_v16, %v1743_v8  ;;  %v1332_v23 = vpack.i.bf16 %v1768_v20, %v1773_v22  ;;  %v1337_v24 = vpack.i.bf16 %v1747_v11, %v1751_v12 }
  0x21   :  { %1293 = vrot.lane.b32.xlu1 %v1292_v14, %s1665_s26  ;;  %1303 = vrot.lane.b32.xlu2 %v1302_v15, %s1666_s27  ;;  %v1347_v25 = vpack.i.bf16 %v1773_v22, %v1768_v20  ;;  %v1377_v27 = vpack.i.bf16 %v1773_v22, %v1743_v8  ;;  %v1407_v28 = vpack.i.bf16 %v1759_v16, %v1733_v3  ;;  %vm1808_vm3 = vcmp.ne.s32.totalorder %v1229_v34, 0 }
  0x22   :  { %1283 = vrot.lane.b32.xlu0 %v1282_v17, %s1665_s26  ;;  %vm1814_vm4 = vcmp.ne.s32.totalorder %v1228_v35, 0  ;;  %vm512_vm5 = vmand %vm229_vm1, %vm1808_vm3  ;;  %v469_v51 = vperm.slane %v465_v41, 0  ;;  %v1841_v62 = vperm.slane %v466_v50, 0  ;;  %v364_v50 = vperm.slane %v1797_v31, 3 }
  0x23   :  { %vm412_vm6 = vmand %vm229_vm1, %vm1814_vm4  ;;  %v513_v39 = vsel %vm512_vm5, 1, %v2838_v29 }
  0x24   :  { %v413_v42 = vsel %vm412_vm6, 1, %v2838_v29  ;;  %v514_v43 = vperm.slane %v513_v39, 0  ;;  %v517_v44 = vperm.slane %v513_v39, 6  ;;  %v515_v52 = vperm.slane %v513_v39, 2 }
  0x25   :  { %v414_v48 = vperm.slane %v413_v42, 0  ;;  %v415_v49 = vperm.slane %v413_v42, 2  ;;  %v516_v54 = vperm.slane %v513_v39, 4  ;;  %v416_v63 = vperm.slane %v413_v42, 4 }
  0x26   :  { %v518_v53 = vperm.slane %v514_v43, 0  ;;  %v521_v55 = vperm.slane %v517_v44, 0  ;;  %v417_v0 = vperm.slane %v413_v42, 6  ;;  %vm473_vm8 = vcmp.eq.s32.totalorder %v469_v51, 1 }
  0x27   :  { %v1837_v60 = vperm.slane %v414_v48, 0  ;;  %v1839_v61 = vperm.slane %v415_v49, 0  ;;  %v1844_v1 = vperm.slane %v515_v52, 0  ;;  %v1846_v2 = vperm.slane %v516_v54, 0 }
  0x28   :  { %vm522_vm11 = vcmp.eq.s32.totalorder %v518_v53, 1  ;;  %vm525_vm12 = vcmp.eq.s32.totalorder %v521_v55, 1  ;;  %vm474_vm15 = vcmp.eq.s32.totalorder %v1841_v62, 1  ;;  %v1872_v21 = vperm.slane %v416_v63, 0 }
  0x29   :  { %1308 = vrot.lane.b32.xlu2 %v1292_v14, %s1666_s27  ;;  %1298 = vrot.lane.b32.xlu1 %v1282_v17, %s1666_s27  ;;  %vm422_vm13 = vcmp.eq.s32.totalorder %v1837_v60, 1  ;;  %vm423_vm14 = vcmp.eq.s32.totalorder %v1839_v61, 1  ;;  %vm523_vm1 = vcmp.eq.s32.totalorder %v1844_v1, 1  ;;  %vm524_vm5 = vcmp.eq.s32.totalorder %v1846_v2, 1 }
  0x2a   :  { %1288 = vrot.lane.b32.xlu0 %v1302_v15, %s1665_s26  ;;  %v463_v44 = vperm.slane %v1797_v31, 0  ;;  %v464_v48 = vperm.slane %v1797_v31, 2  ;;  %v363_v49 = vperm.slane %v1797_v31, 1  ;;  %vm424_vm6 = vcmp.eq.s32.totalorder %v1872_v21, 1 }
  0x31   :  { %1318 = vrot.lane.b32.xlu2 %v1282_v17, %s1667_s30  ;;  %1313 = vrot.lane.b32.xlu1 %v1312_v19, %s1664_s25 }
  0x32   :  { %1323 = vrot.lane.b32.xlu0 %v1302_v15, %s1667_s30 }
  0x39   :  { %1333 = vrot.lane.b32.xlu2 %v1332_v23, %s1665_s26  ;;  %1328 = vrot.lane.b32.xlu1 %v1292_v14, %s1667_s30 }
  0x3a   :  { %1338 = vrot.lane.b32.xlu0 %v1337_v24, %s1664_s25 }
  0x41   :  { %1348 = vrot.lane.b32.xlu2 %v1347_v25, %s1664_s25  ;;  %1343 = vrot.lane.b32.xlu1 %v1332_v23, %s1666_s27 }
  0x42   :  { %1353 = vrot.lane.b32.xlu0 %v1332_v23, %s1667_s30 }
  0x49   :  { %1358 = vrot.lane.b32.xlu1 %v1332_v23, %s1668_s1  ;;  %1363 = vrot.lane.b32.xlu2 %v1302_v15, %s1668_s1 }
  0x4a   :  { %1368 = vrot.lane.b32.xlu0 %v1292_v14, %s1668_s1 }
  0x51   :  { %1373 = vrot.lane.b32.xlu1 %v1372_v26, %s1669_s8  ;;  %1378 = vrot.lane.b32.xlu2 %v1377_v27, %s1669_s8  ;;  %v365_v26 = vperm.slane %v1797_v31, 5  ;;  %v366_v27 = vperm.slane %v1797_v31, 7 }
  0x52   :  { %1383 = vrot.lane.b32.xlu0 %v1332_v23, %s1670_s9 }
  0x53   :  { %v1906_v54 = vperm.slane %v365_v26, 1  ;;  %v1908_v63 = vperm.slane %v366_v27, 1 }
  0x59   :  { %1388 = vrot.lane.b32.xlu1 %v1302_v15, %s1670_s9  ;;  %1393 = vrot.lane.b32.xlu2 %v1292_v14, %s1670_s9 }
  0x5a   :  { %1398 = vrot.lane.b32.xlu0 %v1337_v24, %s1669_s8 }
  0x61   :  { %1403 = vrot.lane.b32.xlu1 %v1282_v17, %s1668_s1  ;;  %1408 = vrot.lane.b32.xlu2 %v1407_v28, %s1669_s8 }
  0x62   :  { %1413 = vrot.lane.b32.xlu0 %v1332_v23, %s1672_s10  ;;  %v1874_v23 = vperm.slane %v417_v0, 0 }
  0x69   :  { %1418 = vrot.lane.b32.xlu1 %v1302_v15, %s1672_s10  ;;  %1423 = vrot.lane.b32.xlu2 %v1292_v14, %s1672_s10 }
  0x6a   :  { %1428 = vrot.lane.b32.xlu0 %v1282_v17, %s1670_s9 }
  0x71   :  { %1433 = vrot.lane.b32.xlu1 %v1282_v17, %s1672_s10 }
  0x7b   :  { %v1799_v32 = vpop.permute.xlu2 %1303 }
  0x7c   :  { %v2843_v56 = vunpack.i.h.bf16 %v1799_v32  ;;  %v2842_v57 = vunpack.i.l.bf16 %v1799_v32 }
  0x83   :  { %v1812_v37 = vpop.permute.xlu2 %1308 }
  0x84   :  { %v1311_v58 = vunpack.i.h.bf16 %v1812_v37  ;;  %v1310_v59 = vunpack.i.l.bf16 %v1812_v37 }
  0x86   :  { %v455_v5 = vsel %vm454_vm7, %v2842_v57, %v1310_v59  ;;  %v456_v6 = vsel %vm454_vm7, %v2843_v56, %v1311_v58 }
  0x87   :  { %v477_v24 = vsel %vm473_vm8, %v455_v5, 0.0  ;;  %v481_v25 = vsel %vm473_vm8, %v456_v6, 0.0  ;;  %vm425_vm8 = vcmp.eq.s32.totalorder %v1874_v23, 1 }
  0x8b   :  { %v1825_v45 = vpop.permute.xlu2 %1318  ;;  %v1829_v47 = vpop.permute.xlu0 %1278 }
  0x8c   :  { %v1321_v28 = vunpack.i.h.bf16 %v1825_v45  ;;  %v1320_v34 = vunpack.i.l.bf16 %v1825_v45  ;;  %v1281_v40 = vunpack.i.h.bf16 %v1829_v47  ;;  %v1280_v41 = vunpack.i.l.bf16 %v1829_v47 }
  0x93   :  { %v1860_v7 = vpop.permute.xlu1 %1293  ;;  %v1862_v9 = vpop.permute.xlu2 %1333 }
  0x94   :  { %v1296_v10 = vunpack.i.h.bf16 %v1860_v7  ;;  %v1295_v13 = vunpack.i.l.bf16 %v1860_v7  ;;  %v1336_v14 = vunpack.i.h.bf16 %v1862_v9  ;;  %v1335_v15 = vunpack.i.l.bf16 %v1862_v9  ;;  %v1284_v17 = vpop.permute.xlu0 %1283 }
  0x95   :  { %v1286_v18 = vunpack.i.h.bf16 %v1284_v17  ;;  %v1285_v19 = vunpack.i.l.bf16 %v1284_v17 }
  0x97   :  { %v509_v35 = vsel %vm503_vm9, %v1286_v18, %v1336_v14  ;;  %v508_v39 = vsel %vm503_vm9, %v1285_v19, %v1335_v15  ;;  %v511_v42 = vsel %vm503_vm9, %v1296_v10, %v1286_v18  ;;  %v510_v43 = vsel %vm503_vm9, %v1295_v13, %v1285_v19 }
  0x98   :  { %v526_v51 = vsel %vm522_vm11, %v508_v39, 0.0  ;;  %v530_v52 = vsel %vm522_vm11, %v509_v35, 0.0  ;;  %v529_v6 = vsel %vm525_vm12, %v510_v43, 0.0  ;;  %v533_v17 = vsel %vm525_vm12, %v511_v42, 0.0 }
  0x99   :  { %v1916_v18 = vperm.slane %v463_v44, 0  ;;  %v1918_v19 = vperm.slane %v464_v48, 0  ;;  %v1925_v35 = vperm.slane %v363_v49, 1  ;;  %v1928_v43 = vperm.slane %v364_v50, 1 }
  0x9a   :  { %vm706_vm11 = vcmask 1045504   ;;  %vm373_vm12 = vcmp.eq.s32.totalorder %v1906_v54, 1 }
  0x9b   :  { %v1910_v0 = vpop.permute.xlu2 %1348  ;;  %v1912_v5 = vpop.permute.xlu1 %1298 }
  0x9c   :  { %v1350_v31 = vunpack.i.l.bf16 %v1910_v0  ;;  %v2840_v53 = vunpack.i.h.bf16 %v1912_v5  ;;  %v2841_v26 = vunpack.i.l.bf16 %v1912_v5  ;;  %v1289_v27 = vpop.permute.xlu0 %1288  ;;  %v1351_v55 = vunpack.i.h.bf16 %v1910_v0 }
  0x9d   :  { %v1291_v39 = vunpack.i.h.bf16 %v1289_v27  ;;  %v1290_v42 = vunpack.i.l.bf16 %v1289_v27 }
  0x9e   :  { %v407_v44 = vsel %vm403_vm10, %v1350_v31, %v1281_v40  ;;  %v409_v48 = vsel %vm403_vm10, %v1280_v41, %v1350_v31  ;;  %v462_v49 = vsel %vm454_vm7, %v1311_v58, %v2840_v53  ;;  %v461_v50 = vsel %vm454_vm7, %v1310_v59, %v2841_v26 }
  0x9f   :  { %v1952_v27 = vsel %vm422_vm13, %v409_v48, 0.0  ;;  %v1956_v31 = vsel %vm423_vm14, %v407_v44, 0.0  ;;  %v482_v29 = vsel %vm474_vm15, %v462_v49, 0.0  ;;  %v478_v58 = vsel %vm474_vm15, %v461_v50, 0.0 }
  0xa0   :  { %v1962_v53 = vpack.c.bf16 %v482_v29, %v481_v25  ;;  %v1964_v37 = vpack.c.bf16 %v478_v58, %v477_v24  ;;  %v505_v59 = vsel %vm503_vm9, %v1291_v39, %v1296_v10  ;;  %v507_v48 = vsel %vm503_vm9, %v1336_v14, %v1291_v39 }
  0xa1   :  { %v504_v44 = vsel %vm503_vm9, %v1290_v42, %v1295_v13  ;;  %v506_v29 = vsel %vm503_vm9, %v1335_v15, %v1290_v42  ;;  %v531_v62 = vsel %vm523_vm1, %v507_v48, 0.0  ;;  %v532_v24 = vsel %vm524_vm5, %v505_v59, 0.0 }
  0xa2   :  { %v527_v10 = vsel %vm523_vm1, %v506_v29, 0.0  ;;  %v536_v14 = vpack.c.bf16 %v531_v62, %v530_v52  ;;  %v528_v7 = vsel %vm524_vm5, %v504_v44, 0.0  ;;  %v537_v25 = vpack.c.bf16 %v533_v17, %v532_v24 }
  0xa3   :  { %v1988_v13 = vpop.permute.xlu1 %1313  ;;  %v534_v9 = vpack.c.bf16 %v527_v10, %v526_v51  ;;  %v535_v39 = vpack.c.bf16 %v529_v6, %v528_v7  ;;  %vm354_vm9 = vcmp.lt.s32.totalorder %v1827_v46, 127  ;;  %v676_v15 = vunpack.c.l.b16 %v1964_v37  ;;  %v2023_v7 = vpop.permute.xlu2 %1363 }
  0xa4   :  { %v680_v42 = vunpack.c.l.b16 %v1962_v53  ;;  %v1316_v49 = vunpack.i.h.bf16 %v1988_v13  ;;  %v1315_v1 = vunpack.i.l.bf16 %v1988_v13  ;;  %v1995_v50 = vpop.permute.xlu0 %1323  ;;  %v698_v52 = vunpack.c.l.b16 %v536_v14 }
  0xa5   :  { %v699_v2 = vunpack.c.h.b16 %v536_v14  ;;  %vm374_vm15 = vcmp.eq.s32.totalorder %v1908_v63, 1  ;;  %v1326_v51 = vunpack.i.h.bf16 %v1995_v50  ;;  %v1325_v6 = vunpack.i.l.bf16 %v1995_v50 }
  0xa6   :  { %v694_v17 = vunpack.c.l.b16 %v534_v9  ;;  %v695_v58 = vunpack.c.h.b16 %v534_v9  ;;  %v408_v59 = vsel %vm403_vm10, %v1316_v49, %v1351_v55  ;;  %v405_v48 = vsel %vm403_vm10, %v1281_v40, %v1315_v1 }
  0xa7   :  { %v411_v44 = vsel %vm403_vm10, %v1315_v1, %v1280_v41  ;;  %v696_v29 = vunpack.c.l.b16 %v535_v39  ;;  %vm735_vm1 = vcmask 1041408   ;;  %v2017_v62 = vsel %vm422_vm13, %v408_v59, 0.0 }
  0xa8   :  { %v432_v24 = vsel %vm424_vm6, %v405_v48, 0.0  ;;  %v433_v10 = vsel %vm425_vm8, %v411_v44, 0.0  ;;  %v702_v14 = vpack.c.b16 %v698_v52, %v694_v17  ;;  %v703_v40 = vpack.c.b16 %v699_v2, %v695_v58 }
  0xa9   :  { %v700_v47 = vunpack.c.l.b16 %v537_v25  ;;  %v697_v9 = vunpack.c.h.b16 %v535_v39  ;;  %v701_v26 = vunpack.c.h.b16 %v537_v25  ;;  %v1366_v1 = vunpack.i.h.bf16 %v2023_v7 }
  0xaa   :  { %v842_v41 = vsel %vm706_vm11, %v702_v14, 0  ;;  %v437_v59 = vpack.c.bf16 %v433_v10, %v432_v24  ;;  %v845_v48 = vsel %vm706_vm11, %v703_v40, 0  ;;  %v684_v44 = vpack.c.b16 %v680_v42, %v676_v15 }
  0xab   :  { %854 = vmatpush.bf16.msra.mxu0 %v842_v41  ;;  %v704_v57 = vpack.c.b16 %v700_v47, %v696_v29  ;;  %v705_v56 = vpack.c.b16 %v701_v26, %v697_v9  ;;  %873 = vmatpush.bf16.msra.mxu1 %v845_v48  ;;  %v1329_v52 = vpop.permute.xlu1 %1328  ;;  %v677_v39 = vunpack.c.h.b16 %v1964_v37  ;;  %v681_v25 = vunpack.c.h.b16 %v1962_v53  ;;  %v2078_v13 = vpop.permute.xlu2 %1378 }
  0xac   :  { %v660_v17 = vunpack.c.l.b16 %v437_v59  ;;  %v661_v2 = vunpack.c.h.b16 %v437_v59  ;;  %v1331_v60 = vunpack.i.h.bf16 %v1329_v52  ;;  %v1330_v24 = vunpack.i.l.bf16 %v1329_v52  ;;  %v1339_v10 = vpop.permute.xlu0 %1338 }
  0xad   :  { %v848_v58 = vsel %vm706_vm11, %v704_v57, 0  ;;  %v851_v14 = vsel %vm706_vm11, %v705_v56, 0  ;;  %vm471_vm13 = vcmp.eq.s32.totalorder %v1916_v18, 1  ;;  %vm472_vm5 = vcmp.eq.s32.totalorder %v1918_v19, 1 }
  0xae   :  { %892 = vmatpush.bf16.msra.mxu2 %v848_v58  ;;  %911 = vmatpush.bf16.msra.mxu3 %v851_v14  ;;  %v1341_v26 = vunpack.i.h.bf16 %v1339_v10  ;;  %v1340_v15 = vunpack.i.l.bf16 %v1339_v10  ;;  %v668_v42 = vpack.c.b16 %v660_v17, %v660_v17  ;;  %v688_v29 = vrot.slane %v684_v44, 6 }
  0xaf   :  { %v362_v57 = vsel %vm354_vm9, %v1331_v60, %v1321_v28  ;;  %v355_v56 = vsel %vm354_vm9, %v1325_v6, %v1330_v24  ;;  %v356_v53 = vsel %vm354_vm9, %v1326_v51, %v1331_v60  ;;  %v361_v37 = vsel %vm354_vm9, %v1330_v24, %v1320_v34 }
  0xb0   :  { %v382_v40 = vsel %vm374_vm15, %v362_v57, 0.0  ;;  %v377_v47 = vsel %vm373_vm12, %v355_v56, 0.0  ;;  %v378_v9 = vsel %vm374_vm15, %v361_v37, 0.0  ;;  %v381_v41 = vsel %vm373_vm12, %v356_v53, 0.0 }
  0xb1   :  { %v2059_v59 = vpack.c.bf16 %v378_v9, %v377_v47  ;;  %v2061_v60 = vpack.c.bf16 %v382_v40, %v381_v41  ;;  %v410_v48 = vsel %vm403_vm10, %v1341_v26, %v1316_v49  ;;  %v404_v44 = vsel %vm403_vm10, %v1340_v15, %v1341_v26 }
  0xb2   :  { %v429_v52 = vsel %vm425_vm8, %v410_v48, 0.0  ;;  %v406_v54 = vsel %vm403_vm10, %v1351_v55, %v1340_v15  ;;  %v428_v63 = vsel %vm424_vm6, %v404_v44, 0.0  ;;  %v790_v17 = vsel %vm735_vm1, %v668_v42, %v688_v29 }
  0xb3   :  { %v2082_v49 = vsel %vm423_vm14, %v406_v54, 0.0  ;;  %893 = vmatpush.bf16.msra.mxu2 %v790_v17  ;;  %v669_v58 = vpack.c.b16 %v661_v2, %v661_v2  ;;  %v685_v23 = vpack.c.b16 %v681_v25, %v677_v39  ;;  %v1381_v14 = vunpack.i.h.bf16 %v2078_v13  ;;  %v1344_v24 = vpop.permute.xlu1 %1343 }
  0xb4   :  { %v1380_v0 = vunpack.i.l.bf16 %v2078_v13  ;;  %vm371_vm10 = vcmp.eq.s32.totalorder %v1925_v35, 1  ;;  %vm372_vm6 = vcmp.eq.s32.totalorder %v1928_v43, 1  ;;  %v435_v21 = vpack.c.bf16 %v429_v52, %v428_v63  ;;  %v1354_v15 = vpop.permute.xlu0 %1353 }
  0xb5   :  { %v689_v55 = vrot.slane %v685_v23, 6  ;;  %v1346_v10 = vunpack.i.h.bf16 %v1344_v24  ;;  %v1345_v26 = vunpack.i.l.bf16 %v1344_v24  ;;  %v636_v61 = vunpack.c.l.b16 %v2059_v59 }
  0xb6   :  { %v1356_v42 = vunpack.i.h.bf16 %v1354_v15  ;;  %v1355_v29 = vunpack.i.l.bf16 %v1354_v15  ;;  %v640_v2 = vunpack.c.l.b16 %v2061_v60  ;;  %v656_v39 = vunpack.c.l.b16 %v435_v21 }
  0xb7   :  { %v794_v25 = vsel %vm735_vm1, %v669_v58, %v689_v55  ;;  %v2848_v57 = vunpack.i.h.bf16 %v1799_v32  ;;  %v2849_v53 = vunpack.i.l.bf16 %v1799_v32  ;;  %v2850_v40 = vunpack.i.l.bf16 %v1912_v5 }
  0xb8   :  { %912 = vmatpush.bf16.msra.mxu3 %v794_v25  ;;  %v2851_v41 = vunpack.i.h.bf16 %v1912_v5  ;;  %v360_v63 = vsel %vm354_vm9, %v1321_v28, %v1356_v42  ;;  %v357_v5 = vsel %vm354_vm9, %v1355_v29, %v1325_v6  ;;  %v358_v18 = vsel %vm354_vm9, %v1356_v42, %v1326_v51 }
  0xb9   :  { %v458_v56 = vsel %vm454_vm7, %v1346_v10, %v2848_v57  ;;  %v457_v37 = vsel %vm454_vm7, %v1345_v26, %v2849_v53  ;;  %v459_v47 = vsel %vm454_vm7, %v2850_v40, %v1345_v26  ;;  %v379_v19 = vsel %vm371_vm10, %v360_v63, 0.0 }
  0xba   :  { %v480_v9 = vsel %vm472_vm5, %v458_v56, 0.0  ;;  %v460_v48 = vsel %vm454_vm7, %v2851_v41, %v1346_v10  ;;  %v475_v32 = vsel %vm471_vm13, %v459_v47, 0.0  ;;  %v476_v44 = vsel %vm472_vm5, %v457_v37, 0.0  ;;  %v2148_v10 = vpop.permute.xlu2 %1393 }
  0xbb   :  { %v479_v52 = vsel %vm471_vm13, %v460_v48, 0.0  ;;  %v2115_v54 = vpack.c.bf16 %v476_v44, %v475_v32  ;;  %v359_v28 = vsel %vm354_vm9, %v1320_v34, %v1355_v29  ;;  %v376_v6 = vsel %vm372_vm6, %v357_v5, 0.0  ;;  %v2150_v34 = vpop.permute.xlu1 %1358  ;;  %vm259_vm9 = vmand %vm122_vm2, %vm1808_vm3 }
  0xbc   :  { %v2125_v17 = vpack.c.bf16 %v480_v9, %v479_v52  ;;  %v375_v58 = vsel %vm371_vm10, %v359_v28, 0.0  ;;  %v380_v23 = vsel %vm372_vm6, %v358_v18, 0.0  ;;  %v644_v24 = vpack.c.b16 %v640_v2, %v636_v61  ;;  %v2154_v43 = vpop.permute.xlu0 %1368 }
  0xbd   :  { %v2143_v55 = vpack.c.bf16 %v376_v6, %v375_v58  ;;  %v2145_v50 = vpack.c.bf16 %v380_v23, %v379_v19  ;;  %v664_v51 = vpack.c.b16 %v656_v39, %v656_v39  ;;  %v637_v45 = vunpack.c.h.b16 %v2059_v59 }
  0xbe   :  { %v648_v35 = vrot.slane %v644_v24, 2  ;;  %v641_v26 = vunpack.c.h.b16 %v2061_v60  ;;  %v657_v15 = vunpack.c.h.b16 %v435_v21  ;;  %v1396_v42 = vunpack.i.h.bf16 %v2148_v10 }
  0xbf   :  { %v1395_v61 = vunpack.i.l.bf16 %v2148_v10  ;;  %vm301_vm7 = vcmp.lt.s32.totalorder %v1827_v46, 1  ;;  %v312_v29 = vperm.slane %v1804_v33, 5  ;;  %v1361_v59 = vunpack.i.h.bf16 %v2150_v34 }
  0xc0   :  { %v775_v2 = vsel %vm116_vm0, %v648_v35, %v664_v51  ;;  %v645_v39 = vpack.c.b16 %v641_v26, %v637_v45  ;;  %v665_v25 = vpack.c.b16 %v657_v15, %v657_v15  ;;  %v1360_v57 = vunpack.i.l.bf16 %v2150_v34 }
  0xc1   :  { %894 = vmatpush.bf16.msra.mxu2 %v775_v2  ;;  %v316_v60 = vperm.slane %v312_v29, 1  ;;  %v305_v21 = vsel %vm301_vm7, %v1361_v59, %v1366_v1  ;;  %v313_v56 = vperm.slane %v1804_v33, 7  ;;  %v1371_v53 = vunpack.i.h.bf16 %v2154_v43 }
  0xc2   :  { %v649_v37 = vrot.slane %v645_v39, 2  ;;  %v2852_v40 = vunpack.i.l.bf16 %v2023_v7  ;;  %v1370_v9 = vunpack.i.l.bf16 %v2154_v43  ;;  %v335_v41 = vpack.c.bf16 %v1747_v11, %v1751_v12  ;;  %v2206_v29 = vpop.permute.xlu2 %1408 }
  0xc3   :  { %vm320_vm14 = vcmp.eq.s32.totalorder %v316_v60, 1  ;;  %v317_v48 = vperm.slane %v313_v56, 1  ;;  %v303_v32 = vsel %vm301_vm7, %v1366_v1, %v1371_v53  ;;  %v337_v44 = vpack.c.bf16 %v1743_v8, %v1735_v4 }
  0xc4   :  { %v304_v47 = vsel %vm301_vm7, %v1360_v57, %v2852_v40  ;;  %v778_v52 = vsel %vm116_vm0, %v649_v37, %v665_v25  ;;  %v328_v63 = vsel %vm320_vm14, %v305_v21, 0.0  ;;  %v2853_v11 = vmov %v2852_v40 }
  0xc5   :  { %v324_v5 = vsel %vm320_vm14, %v304_v47, 0.0  ;;  %v302_v12 = vsel %vm301_vm7, %v2853_v11, %v1370_v9  ;;  %913 = vmatpush.bf16.msra.mxu3 %v778_v52  ;;  %vm321_vm8 = vcmp.eq.s32.totalorder %v317_v48, 1  ;;  %v620_v19 = vunpack.c.l.b16 %v335_v41 }
  0xc6   :  { %v624_v18 = vunpack.c.l.b16 %v337_v44  ;;  %v621_v28 = vunpack.c.h.b16 %v335_v41  ;;  %v329_v1 = vsel %vm321_vm8, %v303_v32, 0.0  ;;  %v325_v58 = vsel %vm321_vm8, %v302_v12, 0.0  ;;  %v1374_v41 = vpop.permute.xlu1 %1373 }
  0xc7   :  { %v625_v6 = vunpack.c.h.b16 %v337_v44  ;;  %v436_v4 = vpack.c.bf16 %v1956_v31, %v1952_v27  ;;  %v2196_v8 = vpack.c.bf16 %v329_v1, %v328_v63  ;;  %v2198_v23 = vpack.c.bf16 %v325_v58, %v324_v5  ;;  %v2226_v5 = vpop.permute.xlu0 %1383 }
  0xc8   :  { %v628_v24 = vpack.c.b16 %v624_v18, %v620_v19  ;;  %v674_v7 = vunpack.c.l.b16 %v2115_v54  ;;  %v678_v26 = vunpack.c.l.b16 %v2125_v17  ;;  %v675_v31 = vunpack.c.h.b16 %v2115_v54 }
  0xc9   :  { %v629_v51 = vpack.c.b16 %v625_v6, %v621_v28  ;;  %v658_v45 = vunpack.c.l.b16 %v436_v4  ;;  %v659_v15 = vunpack.c.h.b16 %v436_v4  ;;  %v679_v2 = vunpack.c.h.b16 %v2125_v17 }
  0xca   :  { %v762_v27 = vsel %vm706_vm11, %v628_v24, %v648_v35  ;;  %vm246_vm12 = vcmp.lt.s32.totalorder %v1827_v46, 15  ;;  %v682_v60 = vpack.c.b16 %v678_v26, %v674_v7  ;;  %v2854_v56 = vmov 0  }
  0xcb   :  { %895 = vmatpush.bf16.msra.mxu2 %v762_v27  ;;  %v766_v39 = vsel %vm706_vm11, %v629_v51, %v649_v37  ;;  %v666_v25 = vpack.c.b16 %v658_v45, %v658_v45  ;;  %v667_v21 = vpack.c.b16 %v659_v15, %v659_v15  ;;  %v683_v36 = vpack.c.b16 %v679_v2, %v675_v31 }
  0xcc   :  { %914 = vmatpush.bf16.msra.mxu3 %v766_v39  ;;  %v260_v40 = vsel %vm259_vm9, 1, %v2854_v56  ;;  %v1411_v47 = vunpack.i.h.bf16 %v2206_v29  ;;  %v1410_v35 = vunpack.i.l.bf16 %v2206_v29  ;;  %v686_v54 = vrot.slane %v682_v60, 6 }
  0xcd   :  { %v261_v48 = vperm.slane %v260_v40, 0  ;;  %v262_v17 = vperm.slane %v260_v40, 2  ;;  %v263_v32 = vperm.slane %v260_v40, 4  ;;  %v687_v44 = vrot.slane %v683_v36, 6 }
  0xce   :  { %v251_v37 = vsel %vm246_vm12, %v1411_v47, %v1381_v14  ;;  %v254_v52 = vsel %vm246_vm12, %v1380_v0, %v1410_v35  ;;  %v264_v63 = vperm.slane %v260_v40, 6  ;;  %v782_v11 = vsel %vm735_vm1, %v666_v25, %v686_v54  ;;  %v1389_v54 = vpop.permute.xlu1 %1388 }
  0xcf   :  { %v2229_v12 = vperm.slane %v261_v48, 0  ;;  %v266_v19 = vperm.slane %v262_v17, 0  ;;  %v2231_v18 = vperm.slane %v263_v32, 0  ;;  %855 = vmatpush.bf16.msra.mxu0 %v782_v11  ;;  %v786_v28 = vsel %vm735_vm1, %v667_v21, %v687_v44 }
  0xd0   :  { %v2234_v1 = vperm.slane %v264_v63, 0  ;;  %v1376_v58 = vunpack.i.h.bf16 %v1374_v41  ;;  %v1375_v6 = vunpack.i.l.bf16 %v1374_v41  ;;  %874 = vmatpush.bf16.msra.mxu1 %v786_v28  ;;  %v1386_v4 = vunpack.i.h.bf16 %v2226_v5  ;;  %v1399_v63 = vpop.permute.xlu0 %1398 }
  0xd1   :  { %vm269_vm3 = vcmp.eq.s32.totalorder %v2229_v12, 1  ;;  %vm270_vm15 = vcmp.eq.s32.totalorder %v266_v19, 1  ;;  %vm271_vm13 = vcmp.eq.s32.totalorder %v2231_v18, 1  ;;  %v1385_v27 = vunpack.i.l.bf16 %v2226_v5 }
  0xd2   :  { %v2239_v24 = vsel %vm270_vm15, %v251_v37, 0.0  ;;  %v2243_v7 = vsel %vm269_vm3, %v254_v52, 0.0  ;;  %vm272_vm5 = vcmp.eq.s32.totalorder %v2234_v1, 1  ;;  %v248_v51 = vsel %vm246_vm12, %v1376_v58, %v1380_v0 }
  0xd3   :  { %v280_v45 = vsel %vm272_vm5, %v248_v51, 0.0  ;;  %v250_v26 = vsel %vm246_vm12, %v1375_v6, %v1376_v58  ;;  %v252_v15 = vsel %vm246_vm12, %v1410_v35, %v1375_v6  ;;  %v434_v39 = vpack.c.bf16 %v2082_v49, %v2017_v62 }
  0xd4   :  { %v2257_v31 = vsel %vm270_vm15, %v252_v15, 0.0  ;;  %v279_v2 = vsel %vm271_vm13, %v250_v26, 0.0  ;;  %v634_v0 = vunpack.c.l.b16 %v2143_v55  ;;  %v638_v25 = vunpack.c.l.b16 %v2145_v50 }
  0xd5   :  { %v635_v60 = vunpack.c.h.b16 %v2143_v55  ;;  %v639_v21 = vunpack.c.h.b16 %v2145_v50  ;;  %v334_v36 = vpack.c.bf16 %v1773_v22, %v1759_v16  ;;  %v654_v40 = vunpack.c.l.b16 %v434_v39 }
  0xd6   :  { %v655_v35 = vunpack.c.h.b16 %v434_v39  ;;  %v336_v41 = vpack.c.bf16 %v1768_v20, %v1733_v3  ;;  %vm196_vm10 = vcmp.lt.s32.totalorder %v1827_v46, 16  ;;  %v642_v62 = vpack.c.b16 %v638_v25, %v634_v0 }
  0xd7   :  { %v643_v49 = vpack.c.b16 %v639_v21, %v635_v60  ;;  %v618_v48 = vunpack.c.l.b16 %v334_v36  ;;  %v619_v17 = vunpack.c.h.b16 %v334_v36  ;;  %v662_v32 = vpack.c.b16 %v654_v40, %v654_v40 }
  0xd8   :  { %v663_v44 = vpack.c.b16 %v655_v35, %v655_v35  ;;  %v622_v55 = vunpack.c.l.b16 %v336_v41  ;;  %v623_v37 = vunpack.c.h.b16 %v336_v41  ;;  %v646_v50 = vrot.slane %v642_v62, 2 }
  0xd9   :  { %v647_v52 = vrot.slane %v643_v49, 2  ;;  %v207_v16 = vperm.slane %v1804_v33, 4  ;;  %v208_v22 = vperm.slane %v1804_v33, 6  ;;  %v1391_v20 = vunpack.i.h.bf16 %v1389_v54 }
  0xda   :  { %v626_v11 = vpack.c.b16 %v622_v55, %v618_v48  ;;  %v627_v3 = vpack.c.b16 %v623_v37, %v619_v17  ;;  %v1390_v19 = vunpack.i.l.bf16 %v1389_v54  ;;  %v769_v28 = vsel %vm116_vm0, %v646_v50, %v662_v32  ;;  %v1404_v55 = vpop.permute.xlu1 %1403 }
  0xdb   :  { %v772_v58 = vsel %vm116_vm0, %v647_v52, %v663_v44  ;;  %v211_v6 = vperm.slane %v207_v16, 0  ;;  %v212_v51 = vperm.slane %v208_v22, 0  ;;  %856 = vmatpush.bf16.msra.mxu0 %v769_v28  ;;  %v198_v39 = vsel %vm196_vm10, %v1391_v20, %v1396_v42 }
  0xdc   :  { %875 = vmatpush.bf16.msra.mxu1 %v772_v58  ;;  %v754_v26 = vsel %vm706_vm11, %v626_v11, %v646_v50  ;;  %v758_v15 = vsel %vm706_vm11, %v627_v3, %v647_v52  ;;  %v1401_v0 = vunpack.i.h.bf16 %v1399_v63  ;;  %v197_v25 = vsel %vm196_vm10, %v1390_v19, %v1395_v61  ;;  %v2320_v58 = vpop.permute.xlu0 %1413 }
  0xdd   :  { %vm215_vm6 = vcmp.eq.s32.totalorder %v211_v6, 1  ;;  %vm216_vm14 = vcmp.eq.s32.totalorder %v212_v51, 1  ;;  %v199_v60 = vsel %vm196_vm10, %v1385_v27, %v1390_v19  ;;  %v200_v36 = vsel %vm196_vm10, %v1386_v4, %v1391_v20 }
  0xde   :  { %v224_v21 = vsel %vm216_vm14, %v198_v39, 0.0  ;;  %v219_v40 = vsel %vm215_vm6, %v199_v60, 0.0  ;;  %v220_v35 = vsel %vm216_vm14, %v197_v25, 0.0  ;;  %v223_v41 = vsel %vm215_vm6, %v200_v36, 0.0 }
  0xdf   :  { %v2294_v54 = vpack.c.bf16 %v220_v35, %v219_v40  ;;  %v253_v62 = vsel %vm246_vm12, %v1401_v0, %v1411_v47  ;;  %v1400_v49 = vunpack.i.l.bf16 %v1399_v63  ;;  %857 = vmatpush.bf16.msra.mxu0 %v754_v26  ;;  %v228_v48 = vpack.c.bf16 %v224_v21, %v223_v41 }
  0xe0   :  { %876 = vmatpush.bf16.msra.mxu1 %v758_v15  ;;  %v2302_v17 = vsel %vm269_vm3, %v253_v62, 0.0  ;;  %v284_v32 = vpack.c.bf16 %v280_v45, %v279_v2  ;;  %v600_v44 = vunpack.c.l.b16 %v2198_v23  ;;  %v604_v47 = vunpack.c.l.b16 %v2196_v8 }
  0xe1   :  { %v247_v37 = vsel %vm246_vm12, %v1400_v49, %v1401_v0  ;;  %v249_v29 = vsel %vm246_vm12, %v1381_v14, %v1400_v49  ;;  %v601_v50 = vunpack.c.h.b16 %v2198_v23  ;;  %v605_v22 = vunpack.c.h.b16 %v2196_v8  ;;  %v2339_v0 = vpop.permute.xlu2 %1423 }
  0xe2   :  { %v275_v12 = vsel %vm271_vm13, %v249_v29, 0.0  ;;  %v276_v45 = vsel %vm272_vm5, %v247_v37, 0.0  ;;  %v584_v2 = vunpack.c.l.b16 %v284_v32  ;;  %v585_v52 = vunpack.c.h.b16 %v284_v32  ;;  %v1419_v35 = vpop.permute.xlu1 %1418 }
  0xe3   :  { %v608_v16 = vpack.c.b16 %v604_v47, %v600_v44  ;;  %v310_v13 = vperm.slane %v1804_v33, 1  ;;  %v311_v63 = vperm.slane %v1804_v33, 3  ;;  %v1406_v3 = vunpack.i.h.bf16 %v1404_v55 }
  0xe4   :  { %v592_v14 = vpack.c.b16 %v584_v2, %v584_v2  ;;  %v593_v11 = vpack.c.b16 %v585_v52, %v585_v52  ;;  %v1405_v20 = vunpack.i.l.bf16 %v1404_v55  ;;  %v609_v19 = vpack.c.b16 %v605_v22, %v601_v50 }
  0xe5   :  { %v612_v23 = vrot.slane %v608_v16, 6  ;;  %v314_v18 = vperm.slane %v310_v13, 1  ;;  %v315_v28 = vperm.slane %v311_v63, 1  ;;  %v307_v8 = vsel %vm301_vm7, %v1406_v3, %v1361_v59  ;;  %v1429_v16 = vpop.permute.xlu0 %1428 }
  0xe6   :  { %v306_v1 = vsel %vm301_vm7, %v1405_v20, %v1360_v57  ;;  %v308_v6 = vsel %vm301_vm7, %v1370_v9, %v1405_v20  ;;  %v309_v51 = vsel %vm301_vm7, %v1371_v53, %v1406_v3  ;;  %v613_v15 = vrot.slane %v609_v19, 6  ;;  %vm154_vm7 = vmand %vm122_vm2, %vm1814_vm4 }
  0xe7   :  { %v746_v26 = vsel %vm735_vm1, %v592_v14, %v612_v23  ;;  %vm318_vm8 = vcmp.eq.s32.totalorder %v314_v18, 1  ;;  %vm319_vm9 = vcmp.eq.s32.totalorder %v315_v28, 1  ;;  %v1416_v53 = vunpack.i.h.bf16 %v2320_v58 }
  0xe8   :  { %896 = vmatpush.bf16.msra.mxu2 %v746_v26  ;;  %v322_v34 = vsel %vm318_vm8, %v308_v6, 0.0  ;;  %v323_v57 = vsel %vm319_vm9, %v306_v1, 0.0  ;;  %v326_v39 = vsel %vm318_vm8, %v309_v51, 0.0  ;;  %v327_v59 = vsel %vm319_vm9, %v307_v8, 0.0 }
  0xe9   :  { %v750_v25 = vsel %vm735_vm1, %v593_v11, %v613_v15  ;;  %v2342_v9 = vpack.c.bf16 %v323_v57, %v322_v34  ;;  %v2344_v43 = vpack.c.bf16 %v327_v59, %v326_v39  ;;  %v1415_v60 = vunpack.i.l.bf16 %v2320_v58 }
  0xea   :  { %915 = vmatpush.bf16.msra.mxu3 %v750_v25  ;;  %v282_v21 = vpack.c.bf16 %v276_v45, %v275_v12  ;;  %v560_v36 = vunpack.c.l.b16 %v2294_v54  ;;  %v564_v40 = vunpack.c.l.b16 %v228_v48  ;;  %v561_v41 = vunpack.c.h.b16 %v2294_v54 }
  0xeb   :  { %v565_v62 = vunpack.c.h.b16 %v228_v48  ;;  %v1426_v49 = vunpack.i.h.bf16 %v2339_v0  ;;  %v1425_v32 = vunpack.i.l.bf16 %v2339_v0  ;;  %vm141_vm12 = vcmp.lt.s32.totalorder %v1827_v46, 17  ;;  %v801_v46 = vld [vmem:[%s2834_s4 + $0x8] sm:$0xff] }
  0xec   :  { %v2356_v44 = vpack.c.b16 %v564_v40, %v560_v36  ;;  %v580_v55 = vunpack.c.l.b16 %v282_v21  ;;  %v581_v37 = vunpack.c.h.b16 %v282_v21  ;;  %v2362_v38 = vsel %vm154_vm7, 1, %v2854_v56  ;;  %v1434_v40 = vpop.permute.xlu1 %1433  ;;  %811 = vperm.xlu0 %1438, %v801_v46  }
  0xed   :  { %v2359_v29 = vpack.c.b16 %v565_v62, %v561_v41  ;;  %v1421_v30 = vunpack.i.h.bf16 %v1419_v35  ;;  %v1420_v47 = vunpack.i.l.bf16 %v1419_v35  ;;  %v158_v12 = vperm.slane %v2362_v38, 4 }
  0xee   :  { %v572_v54 = vrot.slane %v2356_v44, 2  ;;  %v588_v48 = vpack.c.b16 %v580_v55, %v580_v55  ;;  %v589_v50 = vpack.c.b16 %v581_v37, %v581_v37  ;;  %v159_v2 = vperm.slane %v2362_v38, 6 }
  0xef   :  { %v573_v45 = vrot.slane %v2359_v29, 2  ;;  %v143_v52 = vsel %vm141_vm12, %v1421_v30, %v1426_v49  ;;  %v142_v56 = vsel %vm141_vm12, %v1420_v47, %v1425_v32  ;;  %v162_v13 = vperm.slane %v158_v12, 0 }
  0xf0   :  { %v730_v22 = vsel %vm116_vm0, %v572_v54, %v588_v48  ;;  %v144_v63 = vsel %vm141_vm12, %v1415_v60, %v1420_v47  ;;  %v145_v14 = vsel %vm141_vm12, %v1416_v53, %v1421_v30  ;;  %v163_v3 = vperm.slane %v159_v2, 0 }
  0xf1   :  { %897 = vmatpush.bf16.msra.mxu2 %v730_v22  ;;  %v733_v11 = vsel %vm116_vm0, %v573_v45, %v589_v50  ;;  %v205_v20 = vperm.slane %v1804_v33, 0  ;;  %v206_v23 = vperm.slane %v1804_v33, 2  ;;  %vm166_vm2 = vcmp.eq.s32.totalorder %v162_v13, 1 }
  0xf2   :  { %916 = vmatpush.bf16.msra.mxu3 %v733_v11  ;;  %v1431_v19 = vunpack.i.h.bf16 %v1429_v16  ;;  %v1430_v18 = vunpack.i.l.bf16 %v1429_v16  ;;  %v283_v28 = vpack.c.bf16 %v2257_v31, %v2243_v7  ;;  %vm167_vm4 = vcmp.eq.s32.totalorder %v163_v3, 1 }
  0xf3   :  { %v170_v1 = vsel %vm166_vm2, %v144_v63, 0.0  ;;  %v174_v8 = vsel %vm166_vm2, %v145_v14, 0.0  ;;  %v209_v6 = vperm.slane %v205_v20, 0  ;;  %v175_v51 = vsel %vm167_vm4, %v143_v52, 0.0 }
  0xf4   :  { %v171_v26 = vsel %vm167_vm4, %v142_v56, 0.0  ;;  %v210_v15 = vperm.slane %v206_v23, 0  ;;  %v204_v34 = vsel %vm196_vm10, %v1396_v42, %v1431_v19  ;;  %v2400_v57 = vpack.c.bf16 %v175_v51, %v174_v8  ;;  %v800_v23 = vld [vmem:[%s2834_s4] sm:$0xff] }
  0xf5   :  { %v2398_v33 = vpack.c.bf16 %v171_v26, %v170_v1  ;;  %vm213_vm3 = vcmp.eq.s32.totalorder %v209_v6, 1  ;;  %v201_v7 = vsel %vm196_vm10, %v1430_v18, %v1385_v27  ;;  %v202_v39 = vsel %vm196_vm10, %v1431_v19, %v1386_v4  ;;  %806 = vperm.xlu2 %1437, %v800_v23  }
  0xf6   :  { %vm214_vm15 = vcmp.eq.s32.totalorder %v210_v15, 1  ;;  %v221_v31 = vsel %vm213_vm3, %v204_v34, 0.0  ;;  %v203_v42 = vsel %vm196_vm10, %v1395_v61, %v1430_v18  ;;  %v582_v36 = vunpack.c.l.b16 %v283_v28  ;;  %v1258_v15 = vld [vmem:[#allocation7] sm:$0xff] }
  0xf7   :  { %v217_v59 = vsel %vm213_vm3, %v203_v42, 0.0  ;;  %v218_v25 = vsel %vm214_vm15, %v201_v7, 0.0  ;;  %v222_v21 = vsel %vm214_vm15, %v202_v39, 0.0  ;;  %v598_v27 = vunpack.c.l.b16 %v2342_v9 }
  0xf8   :  { %v225_v35 = vpack.c.bf16 %v218_v25, %v217_v59  ;;  %v227_v41 = vpack.c.bf16 %v222_v21, %v221_v31  ;;  %v602_v62 = vunpack.c.l.b16 %v2344_v43  ;;  %v590_v5 = vpack.c.b16 %v582_v36, %v582_v36 }
  0xf9   :  { %v583_v55 = vunpack.c.h.b16 %v283_v28  ;;  %v599_v4 = vunpack.c.h.b16 %v2342_v9  ;;  %v603_v10 = vunpack.c.h.b16 %v2344_v43  ;;  %v156_v61 = vperm.slane %v2362_v38, 0 }
  0xfa   :  { %v606_v37 = vpack.c.b16 %v602_v62, %v598_v27  ;;  %v157_v30 = vperm.slane %v2362_v38, 2  ;;  %v1436_v47 = vunpack.i.h.bf16 %v1434_v40  ;;  %v1435_v12 = vunpack.i.l.bf16 %v1434_v40  ;;  %v803_v40 = vld [vmem:[%s2834_s4 + $0x18] sm:$0xff]  ;;  %v1259_v62 = vld [vmem:[#allocation7 + $0x8] sm:$0xff] }
  0xfb   :  { %v591_v48 = vpack.c.b16 %v583_v55, %v583_v55  ;;  %v607_v50 = vpack.c.b16 %v603_v10, %v599_v4  ;;  %v544_v2 = vunpack.c.l.b16 %v2398_v33  ;;  %v160_v56 = vperm.slane %v156_v61, 0 }
  0xfc   :  { %v610_v52 = vrot.slane %v606_v37, 6  ;;  %v161_v16 = vperm.slane %v157_v30, 0  ;;  %v149_v9 = vsel %vm141_vm12, %v1426_v49, %v1436_v47  ;;  %v146_v38 = vsel %vm141_vm12, %v1435_v12, %v1415_v60 }
  0xfd   :  { %v611_v43 = vrot.slane %v607_v50, 6  ;;  %v147_v22 = vsel %vm141_vm12, %v1436_v47, %v1416_v53  ;;  %v148_v13 = vsel %vm141_vm12, %v1425_v32, %v1435_v12  ;;  %vm164_vm13 = vcmp.eq.s32.totalorder %v160_v56, 1  ;;  %v802_v32 = vld [vmem:[%s2834_s4 + $0x10] sm:$0xff]  ;;  %821 = vperm.xlu2 %1437, %v803_v40   ;;  %s1673_s4 = smov [#allocation11]  }
  0xfe   :  { %v738_v63 = vsel %vm735_vm1, %v590_v5, %v610_v52  ;;  %vm165_vm5 = vcmp.eq.s32.totalorder %v161_v16, 1  ;;  %v548_v49 = vunpack.c.l.b16 %v2400_v57  ;;  %v172_v60 = vsel %vm164_vm13, %v149_v9, 0.0  ;;  %816 = vperm.xlu1 %1439, %v802_v32   ;;  %s1209_s18 = sshll.u32 %s1673_s4, 4  ;;  %s1210_s18 = int_to_ptr.vmem [resolvable:$true] %s1209_s18 }
  0xff   :  { %858 = vmatpush.bf16.msra.mxu0 %v738_v63  ;;  %v742_v14 = vsel %vm735_vm1, %v591_v48, %v611_v43  ;;  %v168_v11 = vsel %vm164_vm13, %v148_v13, 0.0  ;;  %v169_v58 = vsel %vm165_vm5, %v146_v38, 0.0  ;;  %v173_v3 = vsel %vm165_vm5, %v147_v22, 0.0 }
 0x100   :  { %877 = vmatpush.bf16.msra.mxu1 %v742_v14  ;;  %v176_v53 = vpack.c.bf16 %v169_v58, %v168_v11  ;;  %v552_v20 = vpack.c.b16 %v548_v49, %v544_v2  ;;  %v545_v0 = vunpack.c.h.b16 %v2398_v33  ;;  %v178_v19 = vpack.c.bf16 %v173_v3, %v172_v60 }
 0x101   :  { %v549_v18 = vunpack.c.h.b16 %v2400_v57  ;;  %v281_v28 = vpack.c.bf16 %v2239_v24, %v2302_v17  ;;  %v558_v1 = vunpack.c.l.b16 %v225_v35  ;;  %v562_v6 = vunpack.c.l.b16 %v227_v41 }
 0x102   :  { %v717_v8 = vsel %vm706_vm11, %v552_v20, %v572_v54  ;;  %v559_v51 = vunpack.c.h.b16 %v225_v35  ;;  %v563_v26 = vunpack.c.h.b16 %v227_v41  ;;  %vm834_vm1 = vcmask 883712  }
 0x103   :  { %898 = vmatpush.bf16.msra.mxu2 %v717_v8  ;;  %v553_v34 = vpack.c.b16 %v549_v18, %v545_v0  ;;  %v578_v33 = vunpack.c.l.b16 %v281_v28  ;;  %v579_v7 = vunpack.c.h.b16 %v281_v28  ;;  %v566_v57 = vpack.c.b16 %v562_v6, %v558_v1 }
 0x104   :  { %v567_v31 = vpack.c.b16 %v563_v26, %v559_v51  ;;  %v542_v24 = vunpack.c.l.b16 %v176_v53  ;;  %v546_v17 = vunpack.c.l.b16 %v178_v19  ;;  %v543_v42 = vunpack.c.h.b16 %v176_v53 }
 0x105   :  { %v721_v44 = vsel %vm706_vm11, %v553_v34, %v573_v45  ;;  %v586_v39 = vpack.c.b16 %v578_v33, %v578_v33  ;;  %v587_v54 = vpack.c.b16 %v579_v7, %v579_v7  ;;  %v570_v59 = vrot.slane %v566_v57, 2 }
 0x106   :  { %917 = vmatpush.bf16.msra.mxu3 %v721_v44  ;;  %v571_v25 = vrot.slane %v567_v31, 2  ;;  %1242 = vmatmul.msk.bf16.vlgmr.msra.gmra.mxu2 %vm834_vm1, %v1258_v15  ;;  %v550_v21 = vpack.c.b16 %v546_v17, %v542_v24  ;;  %v547_v36 = vunpack.c.h.b16 %v178_v19 }
 0x107   :  { %v724_v35 = vsel %vm116_vm0, %v570_v59, %v586_v39 }
 0x108   :  { %v727_v29 = vsel %vm116_vm0, %v571_v25, %v587_v54  ;;  %v551_v41 = vpack.c.b16 %v547_v36, %v543_v42  ;;  %859 = vmatpush.bf16.msra.mxu0 %v724_v35  ;;  %v709_v45 = vsel %vm706_vm11, %v550_v21, %v570_v59 }
 0x109   :  { %878 = vmatpush.bf16.msra.mxu1 %v727_v29  ;;  %1244 = vmatmul.msk.bf16.vlgmr.msra.gmra.mxu3 %vm834_vm1, %v1258_v15 }
 0x10a   :  { %v713_v27 = vsel %vm706_vm11, %v551_v41, %v571_v25 }
 0x10c   :  { %860 = vmatpush.bf16.msra.mxu0 %v709_v45 }
 0x10d   :  { %879 = vmatpush.bf16.msra.mxu1 %v713_v27 }
 0x10f   :  { %1238 = vmatmul.msk.bf16.vlgmr.msra.gmra.mxu0 %vm834_vm1, %v1258_v15 }
 0x110   :  { %1240 = vmatmul.msk.bf16.vlgmr.msra.gmra.mxu1 %vm834_vm1, %v1258_v15 }
 0x116   :  { %1243 = vmatmul.msk.bf16.gmra.mxu2 %vm834_vm1, %v1259_v62 }
 0x119   :  { %1245 = vmatmul.msk.bf16.gmra.mxu3 %vm834_vm1, %v1259_v62 }
 0x11f   :  { %1239 = vmatmul.msk.bf16.gmra.mxu0 %vm834_vm1, %v1259_v62 }
 0x120   :  { %1241 = vmatmul.msk.bf16.gmra.mxu1 %vm834_vm1, %v1259_v62 }
 0x14f   :  { %v807_v5 = vpop.permute.xlu2 %806 }
 0x15e   :  { %v812_v50 = vpop.permute.xlu0 %811 }
 0x170   :  { %v817_v11 = vpop.permute.xlu1 %816 }
 0x189   :  { %v900_v55 = vpop.f32.mrf.mxu2 }
 0x18a   :  { %v901_v4 = vadd.f32 %v900_v55, %v807_v5 }
 0x18c   :  { %v1248_v10 = vmul.f32 -1.442695, %v901_v4  ;;  %v919_v37 = vpop.f32.mrf.mxu3  ;;  %v862_v61 = vpop.f32.mrf.mxu0 }
 0x18d   :  { %v920_v30 = vadd.f32 %v919_v37, %v807_v5  ;;  %v863_v47 = vadd.f32 %v862_v61, %v807_v5  ;;  %v881_v48 = vpop.f32.mrf.mxu1  ;;  %v2514_v61 = vpop.permute.xlu2 %821 }
 0x18e   :  { %1440 = vpow2.f32 %v1248_v10  ;;  %v882_v52 = vadd.f32 %v881_v48, %v807_v5 }
 0x18f   :  { %v1249_v12 = vmul.f32 -1.442695, %v920_v30  ;;  %v1246_v2 = vmul.f32 -1.442695, %v863_v47 }
 0x190   :  { %v1247_v38 = vmul.f32 -1.442695, %v882_v52 }
 0x191   :  { %v902_v56 = vpop.f32.mrf.mxu2  ;;  %1442 = vpow2.f32 %v1249_v12 }
 0x192   :  { %v903_v16 = vadd.f32 %v902_v56, %v812_v50  ;;  %1444 = vpow2.f32 %v1246_v2 }
 0x194   :  { %v1441_v9 = vpop.eup %1440  ;;  %v1252_v43 = vmul.f32 -1.442695, %v903_v16  ;;  %v921_v22 = vpop.f32.mrf.mxu3 }
 0x195   :  { %v864_v13 = vpop.f32.mrf.mxu0  ;;  %v922_v63 = vadd.f32 %v921_v22, %v812_v50  ;;  %v883_v14 = vpop.f32.mrf.mxu1  ;;  %v2474_v60 = vadd.f32 1.0, %v1441_v9 }
 0x196   :  { %1446 = vpow2.f32 %v1252_v43  ;;  %v865_v49 = vadd.f32 %v864_v13, %v812_v50  ;;  %v884_v53 = vadd.f32 %v883_v14, %v812_v50 }
 0x197   :  { %v1443_v58 = vpop.eup %1442  ;;  %v1253_v3 = vmul.f32 -1.442695, %v922_v63  ;;  %1448 = vpow2.f32 %v1247_v38  ;;  %v986_v45 = vand.u32 2147483648, %v2474_v60  ;;  %v984_v30 = vand.u32 2147483647, %v2474_v60 }
 0x198   :  { %v2476_v20 = vadd.f32 1.0, %v1443_v58  ;;  %v1250_v46 = vmul.f32 -1.442695, %v865_v49  ;;  %v1445_v23 = vpop.eup %1444  ;;  %v1251_v18 = vmul.f32 -1.442695, %v884_v53  ;;  %vm980_vm0 = vweird.f32 %v2474_v60 }
 0x199   :  { %v905_v0 = vpop.f32.mrf.mxu2  ;;  %1450 = vpow2.f32 %v1253_v3  ;;  %v2482_v51 = vadd.f32 1.0, %v1445_v23  ;;  %v2526_v2 = vor.u32 1.1754944e-38, %v986_v45  ;;  %vm2558_vm10 = vcmp.eq.f32.partialorder %v984_v30, 8.507059e+37 }
 0x19a   :  { %v906_v32 = vadd.f32 %v905_v0, %v817_v11  ;;  %1452 = vrcp.f32 %v2474_v60  ;;  %v999_v22 = vand.u32 2147483647, %v2476_v20  ;;  %v1001_v13 = vand.u32 2147483648, %v2476_v20 }
 0x19b   :  { %1454 = vrcp.f32 %v2476_v20  ;;  %v954_v63 = vand.u32 2147483647, %v2482_v51  ;;  %vm995_vm12 = vweird.f32 %v2476_v20  ;;  %vm950_vm13 = vweird.f32 %v2482_v51 }
 0x19c   :  { %v1447_v19 = vpop.eup %1446  ;;  %v1256_v1 = vmul.f32 -1.442695, %v906_v32  ;;  %v924_v8 = vpop.f32.mrf.mxu3  ;;  %1456 = vpow2.f32 %v1250_v46  ;;  %vm2629_vm15 = vcmp.eq.f32.partialorder %v999_v22, 8.507059e+37 }
 0x19d   :  { %v2480_v28 = vadd.f32 1.0, %v1447_v19  ;;  %v867_v6 = vpop.f32.mrf.mxu0  ;;  %v925_v26 = vadd.f32 %v924_v8, %v817_v11  ;;  %v886_v34 = vpop.f32.mrf.mxu1 }
 0x19e   :  { %v868_v15 = vadd.f32 %v867_v6, %v817_v11  ;;  %v1449_v33 = vpop.eup %1448  ;;  %v887_v7 = vadd.f32 %v886_v34, %v817_v11 }
 0x19f   :  { %1458 = vrcp.f32 %v2480_v28  ;;  %v1451_v57 = vpop.eup %1450  ;;  %v1257_v31 = vmul.f32 -1.442695, %v925_v26  ;;  %v2490_v39 = vadd.f32 1.0, %v1449_v33  ;;  %v1062_v37 = vand.u32 2147483648, %v2480_v28 }
 0x1a0   :  { %1460 = vpow2.f32 %v1251_v18  ;;  %v1254_v24 = vmul.f32 -1.442695, %v868_v15  ;;  %v2485_v17 = vpop.eup %1452  ;;  %v2487_v44 = vadd.f32 1.0, %v1451_v57  ;;  %v1255_v42 = vmul.f32 -1.442695, %v887_v7 }
 0x1a1   :  { %1462 = vpow2.f32 %v1256_v1  ;;  %v2492_v54 = vpop.eup %1454  ;;  %v976_v25 = vmul.f32 %v2485_v17, %v2474_v60  ;;  %v907_v55 = vpop.f32.mrf.mxu2  ;;  %vm1056_vm11 = vweird.f32 %v2480_v28  ;;  %v1063_v14 = vor.u32 1.1754944e-38, %v1062_v37 }
 0x1a2   :  { %1464 = vrcp.f32 %v2482_v51  ;;  %v1457_v59 = vpop.eup %1456  ;;  %v2522_v48 = vmul.f32 %v2492_v54, %v2476_v20  ;;  %v908_v12 = vadd.f32 %v907_v55, %v2514_v61  ;;  %v1077_v58 = vand.u32 2147483648, %v2487_v44 }
 0x1a3   :  { %1466 = vpow2.f32 %v1257_v31  ;;  %v2499_v36 = vadd.f32 1.0, %v1457_v59  ;;  %v977_v62 = vsub.f32 1.0, %v976_v25  ;;  %vm981_vm6 = vweird.f32 %v2485_v17 }
 0x1a4   :  { %1468 = vpow2.f32 %v1254_v24  ;;  %v992_v53 = vsub.f32 1.0, %v2522_v48  ;;  %v2574_v34 = vor.u32 1.1754944e-38, %v1077_v58  ;;  %vm1071_vm8 = vweird.f32 %v2487_v44  ;;  %vm2594_vm7 = vmor %vm980_vm0, %vm981_vm6 }
 0x1a5   :  { %v2496_v21 = vpop.eup %1458  ;;  %1470 = vrcp.f32 %v2487_v44  ;;  %v978_v43 = vmul.f32 %v2485_v17, %v977_v62  ;;  %v1032_v18 = vand.u32 2147483648, %v2499_v36  ;;  %v1060_v24 = vand.u32 2147483647, %v2480_v28 }
 0x1a6   :  { %v1461_v40 = vpop.eup %1460  ;;  %1472 = vrcp.f32 %v2490_v39  ;;  %v1052_v29 = vmul.f32 %v2496_v21, %v2480_v28  ;;  %vm1057_vm14 = vweird.f32 %v2496_v21  ;;  %vm1026_vm3 = vweird.f32 %v2499_v36 }
 0x1a7   :  { %v1463_v35 = vpop.eup %1462  ;;  %v2504_v41 = vadd.f32 1.0, %v1461_v40  ;;  %1474 = vpow2.f32 %v1255_v42  ;;  %v979_v1 = vadd.f32 %v2485_v17, %v978_v43  ;;  %v2588_v25 = vor.u32 1.1754944e-38, %v1032_v18  ;;  %vm1058_vm2 = vmor %vm1056_vm11, %vm1057_vm14 }
 0x1a8   :  { %v2507_v27 = vpop.eup %1464  ;;  %1476 = vrcp.f32 %v2499_v36  ;;  %v2510_v5 = vadd.f32 1.0, %v1463_v35  ;;  %v1053_v50 = vsub.f32 1.0, %v1052_v29  ;;  %vm1061_vm4 = vcmp.eq.f32.partialorder %v1060_v24, 8.507059e+37 }
 0x1a9   :  { %v1467_v4 = vpop.eup %1466  ;;  %1478 = vrcp.f32 %v2504_v41  ;;  %v2532_v56 = vmul.f32 %v2507_v27, %v2482_v51  ;;  %v1047_v8 = vand.u32 2147483648, %v2504_v41  ;;  %v983_v55 = vsel %vm2594_vm7, %v2485_v17, %v979_v1 }
 0x1aa   :  { %v1469_v10 = vpop.eup %1468  ;;  %1480 = vrcp.f32 %v2510_v5  ;;  %v2534_v16 = vadd.f32 1.0, %v1467_v4  ;;  %v1054_v46 = vmul.f32 %v2496_v21, %v1053_v50  ;;  %v1138_v33 = vand.u32 2147483648, %v2510_v5  ;;  %v926_v4 = vpop.f32.mrf.mxu3  ;;  %v1163_v50 = vld [vmem:[#allocation5 + $0x10] sm:$0xff] }
 0x1ab   :  { %v2518_v47 = vpop.eup %1470  ;;  %v2536_v9 = vadd.f32 1.0, %v1469_v10  ;;  %v947_v19 = vsub.f32 1.0, %v2532_v56  ;;  %v2600_v45 = vor.u32 1.1754944e-38, %v1047_v8  ;;  %v1136_v37 = vand.u32 2147483647, %v2510_v5 }
 0x1ac   :  { %v2528_v52 = vpop.eup %1472  ;;  %v1067_v11 = vmul.f32 %v2518_v47, %v2487_v44  ;;  %1482 = vrcp.f32 %v2534_v16  ;;  %v1055_v31 = vadd.f32 %v2496_v21, %v1054_v46  ;;  %vm1072_vm9 = vweird.f32 %v2518_v47 }
 0x1ad   :  { %v1475_v38 = vpop.eup %1474  ;;  %v2554_v0 = vmul.f32 %v2528_v52, %v2490_v39  ;;  %1484 = vrcp.f32 %v2536_v9  ;;  %v2615_v30 = vor.u32 1.1754944e-38, %v1138_v33  ;;  %v927_v58 = vadd.f32 %v926_v4, %v2514_v61  ;;  %vm2647_vm11 = vmor %vm1071_vm8, %vm1072_vm9 }
 0x1ae   :  { %v2543_v49 = vpop.eup %1476  ;;  %1486 = vtanh.f32 %v908_v12  ;;  %v2570_v26 = vadd.f32 1.0, %v1475_v38  ;;  %v1068_v15 = vsub.f32 1.0, %v1067_v11  ;;  %v1059_v43 = vsel %vm1058_vm2, %v2496_v21, %v1055_v31 }
 0x1af   :  { %v2549_v3 = vpop.eup %1478  ;;  %v1022_v7 = vmul.f32 %v2543_v49, %v2499_v36  ;;  %v962_v59 = vsub.f32 1.0, %v2554_v0  ;;  %v988_v38 = vsel %vm2558_vm10, %v2526_v2, %v983_v55  ;;  %v1064_v11 = vsel %vm1061_vm4, %v1063_v14, %v1059_v43 }
 0x1b0   :  { %v2562_v23 = vpop.eup %1480  ;;  %v1037_v57 = vmul.f32 %v2549_v3, %v2504_v41  ;;  %1488 = vrcp.f32 %v2570_v26  ;;  %v1069_v10 = vmul.f32 %v2518_v47, %v1068_v15  ;;  %v1167_v18 = vmul.f32 %v1163_v50, %v1064_v11 }
 0x1b1   :  { %v1128_v6 = vmul.f32 %v2562_v23, %v2510_v5  ;;  %v1023_v17 = vsub.f32 1.0, %v1022_v7  ;;  %v993_v8 = vmul.f32 %v2492_v54, %v992_v53  ;;  %vm1027_vm5 = vweird.f32 %v2543_v49 }
 0x1b2   :  { %v2584_v42 = vpop.eup %1482  ;;  %v1038_v12 = vsub.f32 1.0, %v1037_v57  ;;  %v1151_v2 = vand.u32 2147483647, %v2534_v16  ;;  %v1153_v14 = vand.u32 2147483648, %v2534_v16  ;;  %vm1042_vm1 = vweird.f32 %v2549_v3  ;;  %vm2699_vm4 = vmor %vm1026_vm3, %vm1027_vm5 }
 0x1b3   :  { %v1129_v40 = vsub.f32 1.0, %v1128_v6  ;;  %v2598_v29 = vpop.eup %1484  ;;  %v1143_v62 = vmul.f32 %v2584_v42, %v2534_v16  ;;  %v869_v6 = vpop.f32.mrf.mxu0  ;;  %v994_v22 = vadd.f32 %v2492_v54, %v993_v8  ;;  %vm996_vm0 = vweird.f32 %v2492_v54  ;;  %v1161_v8 = vld [vmem:[#allocation5] sm:$0xff] }
 0x1b4   :  { %v1487_v60 = vpop.eup %1486  ;;  %v1098_v48 = vmul.f32 %v2598_v29, %v2536_v9  ;;  %v1070_v33 = vadd.f32 %v2518_v47, %v1069_v10  ;;  %v1024_v57 = vmul.f32 %v2543_v49, %v1023_v17  ;;  %v1039_v31 = vmul.f32 %v2549_v3, %v1038_v12  ;;  %vm2677_vm9 = vmor %vm995_vm12, %vm996_vm0  ;;  %v888_v12 = vpop.f32.mrf.mxu1 }
 0x1b5   :  { %v1130_v28 = vmul.f32 %v2562_v23, %v1129_v40  ;;  %v1144_v46 = vsub.f32 1.0, %v1143_v62  ;;  %v1171_v1 = vmul.f32 %v1487_v60, %v988_v38  ;;  %vm1133_vm10 = vweird.f32 %v2562_v23 }
 0x1b6   :  { %v1099_v32 = vsub.f32 1.0, %v1098_v48  ;;  %v2637_v15 = vpop.eup %1488  ;;  %v1075_v24 = vand.u32 2147483647, %v2487_v44  ;;  %1490 = vtanh.f32 %v927_v58  ;;  %vm1041_vm6 = vweird.f32 %v2504_v41 }
 0x1b7   :  { %v1175_v53 = vadd.f32 %v1171_v1, %v1167_v18  ;;  %v2657_v40 = vadd.f32 %v2562_v23, %v1130_v28  ;;  %v1145_v35 = vmul.f32 %v2584_v42, %v1144_v46  ;;  %v1074_v62 = vsel %vm2647_vm11, %v2518_v47, %v1070_v33  ;;  %v1164_v47 = vld [vmem:[#allocation5 + $0x18] sm:$0xff] }
 0x1b8   :  { %v870_v55 = vadd.f32 %v869_v6, %v2514_v61  ;;  %vm1132_vm14 = vweird.f32 %v2510_v5  ;;  %vm1148_vm8 = vweird.f32 %v2584_v42  ;;  %v2667_v44 = vmul.f32 %v2598_v29, %v1099_v32 }
 0x1b9   :  { %1191 = vst [vmem:[#allocation11 + $0x10] sm:$0xff] %v1175_v53  ;;  %v2671_v4 = vmul.f32 %v2637_v15, %v2570_v26  ;;  %vm1076_vm7 = vcmp.eq.f32.partialorder %v1075_v24, 8.507059e+37  ;;  %v948_v10 = vmul.f32 %v2507_v27, %v947_v19  ;;  %v998_v48 = vsel %vm2677_vm9, %v2492_v54, %v994_v22  ;;  %vm2743_vm9 = vmor %vm1041_vm6, %vm1042_vm1  ;;  %v1162_v24 = vld [vmem:[#allocation5 + $0x8] sm:$0xff] }
 0x1ba   :  { %v1002_v50 = vor.u32 1.1754944e-38, %v1001_v13  ;;  %v1079_v17 = vsel %vm1076_vm7, %v2574_v34, %v1074_v62  ;;  %vm951_vm12 = vweird.f32 %v2507_v27  ;;  %vm1147_vm2 = vweird.f32 %v2534_v16  ;;  %vm2752_vm7 = vmor %vm1132_vm14, %vm1133_vm10 }
 0x1bb   :  { %1492 = vtanh.f32 %v1175_v53  ;;  %v949_v43 = vadd.f32 %v2507_v27, %v948_v10  ;;  %v956_v56 = vand.u32 2147483648, %v2482_v51  ;;  %v1025_v19 = vadd.f32 %v2543_v49, %v1024_v57  ;;  %vm2717_vm3 = vmor %vm950_vm13, %vm951_vm12 }
 0x1bc   :  { %vm2703_vm0 = vcmp.eq.f32.partialorder %v1136_v37, 8.507059e+37  ;;  %v2708_v13 = vadd.f32 %v2584_v42, %v1145_v35  ;;  %v1168_v34 = vmul.f32 %v1164_v47, %v1079_v17  ;;  %v1030_v28 = vand.u32 2147483647, %v2499_v36  ;;  %v1491_v38 = vpop.eup %1490  ;;  %vm2780_vm14 = vmor %vm1147_vm2, %vm1148_vm8 }
 0x1bd   :  { %1494 = vtanh.f32 %v870_v55  ;;  %v1003_v11 = vsel %vm2629_vm15, %v1002_v50, %v998_v48  ;;  %v1029_v58 = vsel %vm2699_vm4, %v2543_v49, %v1025_v19  ;;  %v889_v46 = vadd.f32 %v888_v12, %v2514_v61 }
 0x1be   :  { %v963_v36 = vmul.f32 %v2528_v52, %v962_v59  ;;  %v1172_v18 = vmul.f32 %v1491_v38, %v1003_v11  ;;  %v953_v1 = vsel %vm2717_vm3, %v2507_v27, %v949_v43  ;;  %vm955_vm15 = vcmp.eq.f32.partialorder %v954_v63, 8.507059e+37 }
 0x1bf   :  { %vm1031_vm13 = vcmp.eq.f32.partialorder %v1030_v28, 8.507059e+37  ;;  %v957_v21 = vor.u32 1.1754944e-38, %v956_v56  ;;  %vm965_vm5 = vweird.f32 %v2490_v39  ;;  %vm966_vm11 = vweird.f32 %v2528_v52 }
 0x1c0   :  { %v1034_v32 = vsel %vm1031_vm13, %v2588_v25, %v1029_v58  ;;  %v1176_v61 = vadd.f32 %v1172_v18, %v1168_v34  ;;  %v964_v49 = vadd.f32 %v2528_v52, %v963_v36  ;;  %v1040_v0 = vadd.f32 %v2549_v3, %v1039_v31  ;;  %vm2771_vm10 = vmor %vm965_vm5, %vm966_vm11 }
 0x1c1   :  { %v1045_v59 = vand.u32 2147483647, %v2504_v41  ;;  %v1493_v27 = vpop.eup %1492  ;;  %v958_v63 = vsel %vm955_vm15, %v957_v21, %v953_v1  ;;  %v1165_v25 = vmul.f32 %v1161_v8, %v1034_v32  ;;  %v971_v6 = vand.u32 2147483648, %v2490_v39 }
 0x1c2   :  { %1496 = vtanh.f32 %v889_v46  ;;  %1192 = vst [vmem:[#allocation11 + $0x18] sm:$0xff] %v1176_v61  ;;  %v969_v41 = vand.u32 2147483647, %v2490_v39  ;;  %v1044_v33 = vsel %vm2743_vm9, %v2549_v3, %v1040_v0  ;;  %vm2762_vm6 = vcmp.eq.f32.partialorder %v1151_v2, 8.507059e+37 }
 0x1c3   :  { %v1495_v53 = vpop.eup %1494  ;;  %1498 = vtanh.f32 %v1176_v61  ;;  %vm1046_vm1 = vcmp.eq.f32.partialorder %v1045_v59, 8.507059e+37  ;;  %v1114_v5 = vsub.f32 1.0, %v2671_v4  ;;  %v1154_v35 = vor.u32 1.1754944e-38, %v1153_v14 }
 0x1c4   :  { %v1169_v57 = vmul.f32 %v1495_v53, %v958_v63  ;;  %v1049_v3 = vsel %vm1046_vm1, %v2600_v45, %v1044_v33  ;;  %vm1103_vm12 = vweird.f32 %v2598_v29  ;;  %v968_v39 = vsel %vm2771_vm10, %v2528_v52, %v964_v49 }
 0x1c5   :  { %v1135_v45 = vsel %vm2752_vm7, %v2562_v23, %v2657_v40  ;;  %v972_v55 = vor.u32 1.1754944e-38, %v971_v6  ;;  %v1150_v16 = vsel %vm2780_vm14, %v2584_v42, %v2708_v13  ;;  %v1101_v14 = vadd.f32 %v2598_v29, %v2667_v44 }
 0x1c6   :  { %v1173_v62 = vadd.f32 %v1169_v57, %v1165_v25  ;;  %v1140_v4 = vsel %vm2703_vm0, %v2615_v30, %v1135_v45  ;;  %vm970_vm8 = vcmp.eq.f32.partialorder %v969_v41, 8.507059e+37  ;;  %v1166_v52 = vmul.f32 %v1162_v24, %v1049_v3 }
 0x1c7   :  { %v1183_v60 = vmul.f32 %v1493_v27, %v1140_v4  ;;  %v1108_v23 = vand.u32 2147483648, %v2536_v9  ;;  %v1115_v40 = vmul.f32 %v2637_v15, %v1114_v5  ;;  %v973_v10 = vsel %vm970_vm8, %v972_v55, %v968_v39 }
 0x1c8   :  { %v1497_v47 = vpop.eup %1496  ;;  %1500 = vtanh.f32 %v1173_v62  ;;  %1189 = vst [vmem:[#allocation11] sm:$0xff] %v1173_v62  ;;  %vm1102_vm2 = vweird.f32 %v2536_v9  ;;  %v1106_v30 = vand.u32 2147483647, %v2536_v9  ;;  %v1155_v48 = vsel %vm2762_vm6, %v1154_v35, %v1150_v16 }
 0x1c9   :  { %v1499_v42 = vpop.eup %1498  ;;  %v1170_v44 = vmul.f32 %v1497_v47, %v973_v10  ;;  %1187 = vst [vmem:[#allocation10 + $0x10] sm:$0xff] %v1183_v60  ;;  %vm2814_vm4 = vmor %vm1102_vm2, %vm1103_vm12  ;;  %v1109_v9 = vor.u32 1.1754944e-38, %v1108_v23  ;;  %v1116_v56 = vadd.f32 %v2637_v15, %v1115_v40  ;;  %vm1118_vm0 = vweird.f32 %v2637_v15 }
 0x1ca   :  { %v1184_v17 = vmul.f32 %v1499_v42, %v1155_v48  ;;  %v1105_v43 = vsel %vm2814_vm4, %v2598_v29, %v1101_v14  ;;  %vm1107_vm3 = vcmp.eq.f32.partialorder %v1106_v30, 8.507059e+37  ;;  %v1123_v19 = vand.u32 2147483648, %v2570_v26 }
 0x1cb   :  { %v1174_v12 = vadd.f32 %v1170_v44, %v1166_v52  ;;  %vm1117_vm15 = vweird.f32 %v2570_v26  ;;  %v1121_v54 = vand.u32 2147483647, %v2570_v26  ;;  %v1110_v13 = vsel %vm1107_vm3, %v1109_v9, %v1105_v43 }
 0x1cc   :  { %1188 = vst [vmem:[#allocation10 + $0x18] sm:$0xff] %v1184_v17  ;;  %vm1119_vm13 = vmor %vm1117_vm15, %vm1118_vm0  ;;  %v1124_v28 = vor.u32 1.1754944e-38, %v1123_v19 }
 0x1cd   :  { %1502 = vtanh.f32 %v1174_v12  ;;  %1190 = vst [vmem:[#allocation11 + $0x8] sm:$0xff] %v1174_v12  ;;  %v1120_v34 = vsel %vm1119_vm13, %v2637_v15, %v1116_v56  ;;  %vm1122_vm5 = vcmp.eq.f32.partialorder %v1121_v54, 8.507059e+37 }
 0x1ce   :  { %v1501_v20 = vpop.eup %1500  ;;  %1214 = dma.vmem_to_hbm [thread:$0]  %s1210_s18, 512, %s1212_s20, [#allocation12]   ;;  %v1125_v11 = vsel %vm1122_vm5, %v1124_v28, %v1120_v34 }
 0x1cf   :  { %v1181_v29 = vmul.f32 %v1501_v20, %v1110_v13 }
 0x1d1   :  { %1185 = vst [vmem:[#allocation10] sm:$0xff] %v1181_v29 }
 0x1d3   :  { %v1503_v38 = vpop.eup %1502 }
 0x1d4   :  { %v1182_v37 = vmul.f32 %v1503_v38, %v1125_v11 }
 0x1d6   :  { %1186 = vst [vmem:[#allocation10 + $0x8] sm:$0xff] %v1182_v37 }
 0x1d7   :  { %1203 = dma.vmem_to_hbm [thread:$0]  %s1199_s3, 512, %s1201_s5, [#allocation4]  }
 0x1d8   :  { %1654 = dma.done.wait [#allocation4], 512  }
 0x1d9   :  { %1655 = vsyncadd [#allocation4], 4294966784 }
 0x1da   :  { %1656 = dma.done.wait [#allocation12], 512  }
 0x1db   :  { %1657 = vsyncadd [#allocation12], 4294966784 }
 0x1dc   :  { %1223 = vsyncpa [#allocation3], 1 }
 0x1dd   :  { %1224 = vsyncpa [#allocation6], 1 }
 0x1de   :  { %1225 = vsyncpa [#allocation9], 1 }
 0x1df   :  { %1226 = vsyncpa [#allocation4], 1 }
 0x1e0   :  { %1227 = vsyncpa [#allocation12], 1 }

</bundles_post_ra>
